<compile_context>
chip_gen: v7x
topology: tpu7x:2x2x1
jax: 0.10.0
libtpu: 0.0.40
codegen_flags: <defaults>
</compile_context>

<pallas_src>
import functools
import math

import jax
import jax.numpy as jnp
from jax import lax
from jax.experimental import pallas as pl
from jax.experimental.pallas import tpu as pltpu

LN_EPS = 1e-5
_VMEM_LIMIT = 48 * 1024 * 1024


def _pick_tile(n, target=128):
    """Largest divisor of n that is <= target and a multiple of 8 (or n itself)."""
    if n <= target:
        return n
    t = target - (target % 8)
    while t >= 8:
        if n % t == 0:
            return t
        t -= 8
    return n


def _layer_norm(x, gamma, beta):
    mu = jnp.mean(x, axis=-1, keepdims=True)
    var = jnp.mean((x - mu) ** 2, axis=-1, keepdims=True)
    return (x - mu) * lax.rsqrt(var + LN_EPS) * gamma + beta


# ----------------------------------------------------------------------------
# Kernel 1: pairwise squared distances, dist = |x|^2 + |y|^2 - 2 * x @ y^T (MXU)
# ----------------------------------------------------------------------------
def _dist_kernel(x_ref, xt_ref, ysq_ref, dist_ref):
    x = x_ref[0]                                               # [TN, 3] f32
    xt = xt_ref[0]                                             # [3, N]  f32
    xx = jnp.dot(x, xt, preferred_element_type=jnp.float32)    # [TN, N] (MXU)
    x_sq = jnp.sum(x * x, axis=-1, keepdims=True)              # [TN, 1]
    dist_ref[0] = x_sq + ysq_ref[0] - 2.0 * xx


def square_distance_pallas(xyz, tile_n):
    B, N, _ = xyz.shape
    xyz_t = jnp.transpose(xyz, (0, 2, 1))                      # [B, 3, N]
    y_sq = jnp.sum(xyz * xyz, axis=-1, keepdims=True)          # [B, N, 1]
    y_sq = jnp.transpose(y_sq, (0, 2, 1))                      # [B, 1, N]
    nt = N // tile_n
    return pl.pallas_call(
        _dist_kernel,
        out_shape=jax.ShapeDtypeStruct((B, N, N), jnp.float32),
        grid_spec=pltpu.PrefetchScalarGridSpec(
            num_scalar_prefetch=0,
            grid=(B, nt),
            in_specs=[
                pl.BlockSpec((1, tile_n, 3), lambda b, i: (b, i, 0)),
                pl.BlockSpec((1, 3, N), lambda b, i: (b, 0, 0)),
                pl.BlockSpec((1, 1, N), lambda b, i: (b, 0, 0)),
            ],
            out_specs=pl.BlockSpec((1, tile_n, N), lambda b, i: (b, i, 0)),
        ),
        compiler_params=pltpu.CompilerParams(
            dimension_semantics=("parallel", "parallel"),
            vmem_limit_bytes=_VMEM_LIMIT),
    )(xyz, xyz_t, y_sq)


# ----------------------------------------------------------------------------
# Kernel 2: x = LayerNorm(Linear(features)); qkv = x @ [Wq | Wk | Wv]  (fused)
# ----------------------------------------------------------------------------
def _proj_kernel(feat_ref, w1_ref, b1_ref, g1_ref, be1_ref, wqkv_ref, qkv_ref):
    x = jnp.dot(feat_ref[0].astype(jnp.bfloat16), w1_ref[...],
                preferred_element_type=jnp.float32) + b1_ref[...]
    x = _layer_norm(x, g1_ref[...], be1_ref[...])
    qkv_ref[0] = jnp.dot(x.astype(jnp.bfloat16), wqkv_ref[...],
                         preferred_element_type=jnp.float32)


def project_pallas(features, params, tile_n):
    B, N, dp = features.shape
    dm = params["w_fc1"].shape[1]
    nt = N // tile_n
    w1 = params["w_fc1"].astype(jnp.bfloat16)
    wqkv = params["w_qkv"].astype(jnp.bfloat16)
    full = lambda a: pl.BlockSpec(a.shape, lambda b, i: (0,) * a.ndim)
    return pl.pallas_call(
        _proj_kernel,
        out_shape=jax.ShapeDtypeStruct((B, N, 3 * dm), jnp.float32),
        grid_spec=pltpu.PrefetchScalarGridSpec(
            num_scalar_prefetch=0,
            grid=(B, nt),
            in_specs=[
                pl.BlockSpec((1, tile_n, dp), lambda b, i: (b, i, 0)),
                full(w1), full(params["b_fc1"]),
                full(params["g_ln1"]), full(params["be_ln1"]),
                full(wqkv),
            ],
            out_specs=pl.BlockSpec((1, tile_n, 3 * dm), lambda b, i: (b, i, 0)),
        ),
        compiler_params=pltpu.CompilerParams(
            dimension_semantics=("parallel", "parallel"),
            vmem_limit_bytes=_VMEM_LIMIT),
    )(features, w1, params["b_fc1"], params["g_ln1"], params["be_ln1"], wqkv)


# ----------------------------------------------------------------------------
# Kernel 3: in-kernel k/v gather (one-hot MXU matmul), fc_delta pos-enc,
#           attention logits + softmax, weighted sum, fc2 + LayerNorm + residual
# ----------------------------------------------------------------------------
def _attn_kernel(q_ref, kx_ref, vx_ref, idx_ref, rp_ref, pre_ref,
                 wd1_ref, bd1_ref, wd2_ref, bd2_ref,
                 wf2_ref, bf2_ref, g2_ref, be2_ref,
                 res_ref, attn_ref, *, tile_n, knn_k, d_model):
    N = kx_ref.shape[1]
    NK = tile_n * knn_k

    # fc_delta positional encoding on flattened [TN*K, 3] relative coords.
    rp = rp_ref[0].astype(jnp.bfloat16)                               # [NK, 3]
    h = jnp.dot(rp, wd1_ref[...],
                preferred_element_type=jnp.float32) + bd1_ref[...]
    h = jnp.maximum(h, 0.0)
    pos = jnp.dot(h.astype(jnp.bfloat16), wd2_ref[...],
                  preferred_element_type=jnp.float32) + bd2_ref[...]  # [NK, dm]

    # Neighbour gather of k/v rows as a one-hot matmul on the MXU.
    idx = idx_ref[0]                                                  # [NK, 1] int32
    iota = lax.broadcasted_iota(jnp.int32, (NK, N), 1)
    onehot = (iota == idx).astype(jnp.bfloat16)                       # [NK, N]
    kk = jnp.dot(onehot, kx_ref[0].astype(jnp.bfloat16),
                 preferred_element_type=jnp.float32)                  # [NK, dm]
    vv = jnp.dot(onehot, vx_ref[0].astype(jnp.bfloat16),
                 preferred_element_type=jnp.float32)                  # [NK, dm]

    kp = (kk + pos).reshape(tile_n, knn_k, d_model)
    vp = (vv + pos).reshape(tile_n, knn_k, d_model)

    # attention logits: q . (k + pos_enc) / sqrt(d_model)
    q = q_ref[0]                                                      # [TN, dm]
    scale = 1.0 / math.sqrt(float(d_model))
    logits = jnp.sum(q[:, None, :] * kp, axis=-1) * scale             # [TN, K]

    # softmax over K neighbours (EUP reciprocal instead of a VPU divide)
    m = jnp.max(logits, axis=-1, keepdims=True)
    e = jnp.exp(logits - m)
    attn = e * pl.reciprocal(jnp.sum(e, axis=-1, keepdims=True), approx=True)
    attn_ref[0] = attn

    # weighted sum over neighbours of (v + pos_enc)
    res = jnp.sum(attn[:, :, None] * vp, axis=1)                      # [TN, dm]

    # fc2 -> LayerNorm -> residual with pre-features
    y = jnp.dot(res.astype(jnp.bfloat16), wf2_ref[...],
                preferred_element_type=jnp.float32) + bf2_ref[...]
    y = _layer_norm(y, g2_ref[...], be2_ref[...])
    res_ref[0] = y + pre_ref[0]


def attention_pallas(q, kx, vx, idx_flat, rel_flat, pre, params, tile_n, knn_k):
    B, N, dm = q.shape
    dp = pre.shape[-1]
    nt = N // tile_n
    nk = tile_n * knn_k
    wd1 = params["w_d1"].astype(jnp.bfloat16)
    wd2 = params["w_d2"].astype(jnp.bfloat16)
    wf2 = params["w_fc2"].astype(jnp.bfloat16)
    full = lambda a: pl.BlockSpec(a.shape, lambda b, i: (0,) * a.ndim)
    kernel = functools.partial(_attn_kernel, tile_n=tile_n, knn_k=knn_k,
                               d_model=dm)
    return pl.pallas_call(
        kernel,
        out_shape=(jax.ShapeDtypeStruct((B, N, dp), jnp.float32),
                   jax.ShapeDtypeStruct((B, N, knn_k), jnp.float32)),
        grid_spec=pltpu.PrefetchScalarGridSpec(
            num_scalar_prefetch=0,
            grid=(B, nt),
            in_specs=[
                pl.BlockSpec((1, tile_n, dm), lambda b, i: (b, i, 0)),   # q tile
                pl.BlockSpec((1, N, dm), lambda b, i: (b, 0, 0)),        # kx (full)
                pl.BlockSpec((1, N, dm), lambda b, i: (b, 0, 0)),        # vx (full)
                pl.BlockSpec((1, nk, 1), lambda b, i: (b, i, 0)),        # knn idx
                pl.BlockSpec((1, nk, 3), lambda b, i: (b, i, 0)),        # rel pos
                pl.BlockSpec((1, tile_n, dp), lambda b, i: (b, i, 0)),   # residual
                full(wd1), full(params["b_d1"]),
                full(wd2), full(params["b_d2"]),
                full(wf2), full(params["b_fc2"]),
                full(params["g_ln2"]), full(params["be_ln2"]),
            ],
            out_specs=[pl.BlockSpec((1, tile_n, dp), lambda b, i: (b, i, 0)),
                       pl.BlockSpec((1, tile_n, knn_k), lambda b, i: (b, i, 0))],
        ),
        compiler_params=pltpu.CompilerParams(
            dimension_semantics=("parallel", "parallel"),
            vmem_limit_bytes=_VMEM_LIMIT),
    )(q, kx, vx, idx_flat, rel_flat, pre,
      wd1, params["b_d1"], wd2, params["b_d2"],
      wf2, params["b_fc2"], params["g_ln2"], params["be_ln2"])


# ----------------------------------------------------------------------------
# Full forward pass
# ----------------------------------------------------------------------------
def transformer_block_forward(xyz, features, params, knn_k):
    B, N, _ = xyz.shape
    dm = params["w_fc1"].shape[1]
    tile_n = _pick_tile(N)

    # kNN selection: pairwise distances (Pallas/MXU) + top-k in XLA.
    dists = square_distance_pallas(xyz, tile_n)                  # [B, N, N]
    # TODO(synk): top-k / sorting has no clean Pallas TPU equivalent; done in XLA.
    _, knn_idx = lax.top_k(-dists, knn_k)                        # [B, N, K] int32

    # relative positions of neighbours (tiny, 3 channels -> XLA gather is fine)
    knn_xyz = jax.vmap(lambda p, i: p[i])(xyz, knn_idx)          # [B, N, K, 3]
    rel_pos = xyz[:, :, None, :] - knn_xyz                       # [B, N, K, 3]
    rel_flat = rel_pos.reshape(B, N * knn_k, 3)
    idx_flat = knn_idx.reshape(B, N * knn_k, 1).astype(jnp.int32)

    # fused fc1 + LayerNorm + QKV projection (Pallas)
    qkv = project_pallas(features, params, tile_n)               # [B, N, 3*dm]
    q = qkv[..., :dm]
    kx = qkv[..., dm:2 * dm]
    vx = qkv[..., 2 * dm:]

    # attention + fc2 + residual (Pallas); neighbour gather happens in-kernel.
    res, attn = attention_pallas(q, kx, vx, idx_flat, rel_flat, features,
                                 params, tile_n, knn_k)
    return res, attn[:, :, None, :]                              # torch: [B,N,1,K]


def init_params(key, d_points, d_model):
    ks = jax.random.split(key, 8)
    s = 0.1
    w_q = s * jax.random.normal(ks[2], (d_model, d_model), jnp.float32)
    w_k = s * jax.random.normal(ks[3], (d_model, d_model), jnp.float32)
    w_v = s * jax.random.normal(ks[4], (d_model, d_model), jnp.float32)
    return {
        "w_fc1": s * jax.random.normal(ks[0], (d_points, d_model), jnp.float32),
        "b_fc1": s * jax.random.normal(ks[1], (1, d_model), jnp.float32),
        "g_ln1": jnp.ones((1, d_model), jnp.float32),
        "be_ln1": jnp.zeros((1, d_model), jnp.float32),
        "w_qkv": jnp.concatenate([w_q, w_k, w_v], axis=1),       # fused [dm, 3*dm]
        "w_d1": s * jax.random.normal(ks[5], (3, d_model), jnp.float32),
        "b_d1": jnp.zeros((1, d_model), jnp.float32),
        "w_d2": s * jax.random.normal(ks[6], (d_model, d_model), jnp.float32),
        "b_d2": jnp.zeros((1, d_model), jnp.float32),
        "w_fc2": s * jax.random.normal(ks[7], (d_model, d_points), jnp.float32),
        "b_fc2": jnp.zeros((1, d_points), jnp.float32),
        "g_ln2": jnp.ones((1, d_points), jnp.float32),
        "be_ln2": jnp.zeros((1, d_points), jnp.float32),
    }


if __name__ == "__main__":
    B, N = 2, 16
    d_points, d_model, knn_k = 8, 32, 8

    key = jax.random.PRNGKey(0)
    k_xyz, k_feat, k_par = jax.random.split(key, 3)
    xyz = jax.random.normal(k_xyz, (B, N, 3), jnp.float32)
    features = jax.random.normal(k_feat, (B, N, d_points), jnp.float32)
    params = init_params(k_par, d_points, d_model)

    fwd = jax.jit(lambda x, f: transformer_block_forward(x, f, params, knn_k))
    res, attn = fwd(xyz, features)
    jax.block_until_ready((res, attn))

    assert res.shape == (B, N, d_points)
    assert attn.shape == (B, N, 1, knn_k)
    print("KERNEL_OK")
</pallas_src>

<mosaic_0001>
module attributes {stable_mosaic.version = 11 : i64} {
  func.func @_dist_kernel(%arg0: i32, %arg1: i32, %arg2: memref<1x16x3xf32, #tpu.memory_space<vmem>>, %arg3: memref<1x3x16xf32, #tpu.memory_space<vmem>>, %arg4: memref<1x1x16xf32, #tpu.memory_space<vmem>>, %arg5: memref<1x16x16xf32, #tpu.memory_space<vmem>>) attributes {dimension_semantics = [#tpu.dimension_semantics<parallel>, #tpu.dimension_semantics<parallel>], iteration_bounds = array<i64: 2, 1>, scalar_prefetch = 0 : i64, scratch_operands = 0 : i64, tpu.core_type = #tpu.core_type<tc>, window_params = [{transform_indices = @transform_0, window_bounds = array<i64: 1, 16, 3>}, {transform_indices = @transform_1, window_bounds = array<i64: 1, 3, 16>}, {transform_indices = @transform_2, window_bounds = array<i64: 1, 1, 16>}, {transform_indices = @transform_3, window_bounds = array<i64: 1, 16, 16>}]} {
    %c0 = arith.constant 0 : index
    %c0_0 = arith.constant 0 : index
    %c0_1 = arith.constant 0 : index
    %0 = vector.load %arg2[%c0, %c0_0, %c0_1] : memref<1x16x3xf32, #tpu.memory_space<vmem>>, vector<1x16x3xf32>
    %1 = vector.shape_cast %0 : vector<1x16x3xf32> to vector<16x3xf32>
    %c0_2 = arith.constant 0 : index
    %c0_3 = arith.constant 0 : index
    %c0_4 = arith.constant 0 : index
    %2 = vector.load %arg3[%c0_2, %c0_3, %c0_4] : memref<1x3x16xf32, #tpu.memory_space<vmem>>, vector<1x3x16xf32>
    %3 = vector.shape_cast %2 : vector<1x3x16xf32> to vector<3x16xf32>
    %cst = arith.constant dense<0.000000e+00> : vector<16x16xf32>
    %4 = tpu.matmul %1, %3, %cst {dimension_numbers = #tpu.dot_dimension_numbers<[1], [0], [0], [1], [0, 0, 1, 1], [], []>} : vector<16x3xf32>, vector<3x16xf32>, vector<16x16xf32> -> vector<16x16xf32>
    %5 = arith.mulf %1, %1 : vector<16x3xf32>
    %cst_5 = arith.constant dense<0.000000e+00> : vector<16xf32>
    %6 = vector.multi_reduction <add>, %5, %cst_5 [1] : vector<16x3xf32> to vector<16xf32>
    %7 = vector.shape_cast %6 : vector<16xf32> to vector<16x1xf32>
    %c0_6 = arith.constant 0 : index
    %c0_7 = arith.constant 0 : index
    %c0_8 = arith.constant 0 : index
    %8 = vector.load %arg4[%c0_6, %c0_7, %c0_8] : memref<1x1x16xf32, #tpu.memory_space<vmem>>, vector<1x1x16xf32>
    %9 = vector.shape_cast %8 : vector<1x1x16xf32> to vector<1x16xf32>
    %10 = vector.broadcast %7 : vector<16x1xf32> to vector<16x16xf32>
    %11 = vector.broadcast %9 : vector<1x16xf32> to vector<16x16xf32>
    %12 = arith.addf %10, %11 : vector<16x16xf32>
    %cst_9 = arith.constant 2.000000e+00 : f32
    %13 = vector.broadcast %cst_9 : f32 to vector<16x16xf32>
    %14 = arith.mulf %13, %4 : vector<16x16xf32>
    %15 = arith.subf %12, %14 : vector<16x16xf32>
    %c0_10 = arith.constant 0 : index
    %c0_11 = arith.constant 0 : index
    %c0_12 = arith.constant 0 : index
    %16 = vector.load %arg5[%c0_10, %c0_11, %c0_12] : memref<1x16x16xf32, #tpu.memory_space<vmem>>, vector<1x16x16xf32>
    %17 = vector.shape_cast %16 : vector<1x16x16xf32> to vector<16x16xf32>
    %18 = vector.shape_cast %15 : vector<16x16xf32> to vector<1x16x16xf32>
    tpu.vector_store %arg5[%c0_10, %c0_11, %c0_12], %18 {strides = array<i32>} : memref<1x16x16xf32, #tpu.memory_space<vmem>>, vector<1x16x16xf32>,
    return
  }
  func.func @transform_0(%arg0: i32, %arg1: i32) -> (i32, i32, i32) {
    %c0_i32 = arith.constant 0 : i32
    %c0_i32_0 = arith.constant 0 : i32
    return %arg0, %arg1, %c0_i32 : i32, i32, i32
  }
  func.func @transform_1(%arg0: i32, %arg1: i32) -> (i32, i32, i32) {
    %c0_i32 = arith.constant 0 : i32
    %c0_i32_0 = arith.constant 0 : i32
    %c0_i32_1 = arith.constant 0 : i32
    return %arg0, %c0_i32, %c0_i32_0 : i32, i32, i32
  }
  func.func @transform_2(%arg0: i32, %arg1: i32) -> (i32, i32, i32) {
    %c0_i32 = arith.constant 0 : i32
    %c0_i32_0 = arith.constant 0 : i32
    %c0_i32_1 = arith.constant 0 : i32
    return %arg0, %c0_i32, %c0_i32_0 : i32, i32, i32
  }
  func.func @transform_3(%arg0: i32, %arg1: i32) -> (i32, i32, i32) {
    %c0_i32 = arith.constant 0 : i32
    %c0_i32_0 = arith.constant 0 : i32
    return %arg0, %arg1, %c0_i32 : i32, i32, i32
  }
}

module attributes {stable_mosaic.version = 11 : i64} {
  func.func @_proj_kernel(%arg0: i32, %arg1: i32, %arg2: memref<1x16x8xf32, #tpu.memory_space<vmem>>, %arg3: memref<8x32xbf16, #tpu.memory_space<vmem>>, %arg4: memref<1x32xf32, #tpu.memory_space<vmem>>, %arg5: memref<1x32xf32, #tpu.memory_space<vmem>>, %arg6: memref<1x32xf32, #tpu.memory_space<vmem>>, %arg7: memref<32x96xbf16, #tpu.memory_space<vmem>>, %arg8: memref<1x16x96xf32, #tpu.memory_space<vmem>>) attributes {dimension_semantics = [#tpu.dimension_semantics<parallel>, #tpu.dimension_semantics<parallel>], iteration_bounds = array<i64: 2, 1>, scalar_prefetch = 0 : i64, scratch_operands = 0 : i64, tpu.core_type = #tpu.core_type<tc>, window_params = [{transform_indices = @transform_0, window_bounds = array<i64: 1, 16, 8>}, {pipeline_mode = #tpu.pipeline_mode<synchronous>, transform_indices = @transform_1, window_bounds = array<i64: 8, 32>}, {pipeline_mode = #tpu.pipeline_mode<synchronous>, transform_indices = @transform_2, window_bounds = array<i64: 1, 32>}, {pipeline_mode = #tpu.pipeline_mode<synchronous>, transform_indices = @transform_3, window_bounds = array<i64: 1, 32>}, {pipeline_mode = #tpu.pipeline_mode<synchronous>, transform_indices = @transform_4, window_bounds = array<i64: 1, 32>}, {pipeline_mode = #tpu.pipeline_mode<synchronous>, transform_indices = @transform_5, window_bounds = array<i64: 32, 96>}, {transform_indices = @transform_6, window_bounds = array<i64: 1, 16, 96>}]} {
    %c0 = arith.constant 0 : index
    %c0_0 = arith.constant 0 : index
    %c0_1 = arith.constant 0 : index
    %0 = vector.load %arg2[%c0, %c0_0, %c0_1] : memref<1x16x8xf32, #tpu.memory_space<vmem>>, vector<1x16x8xf32>
    %1 = vector.shape_cast %0 : vector<1x16x8xf32> to vector<16x8xf32>
    %2 = arith.truncf %1 : vector<16x8xf32> to vector<16x8xbf16>
    %c0_2 = arith.constant 0 : index
    %c0_3 = arith.constant 0 : index
    %3 = vector.load %arg3[%c0_2, %c0_3] : memref<8x32xbf16, #tpu.memory_space<vmem>>, vector<8x32xbf16>
    %cst = arith.constant dense<0.000000e+00> : vector<16x32xf32>
    %4 = tpu.matmul %2, %3, %cst {dimension_numbers = #tpu.dot_dimension_numbers<[1], [0], [0], [1], [0, 0, 1, 1], [], []>} : vector<16x8xbf16>, vector<8x32xbf16>, vector<16x32xf32> -> vector<16x32xf32>
    %c0_4 = arith.constant 0 : index
    %c0_5 = arith.constant 0 : index
    %5 = vector.load %arg4[%c0_4, %c0_5] : memref<1x32xf32, #tpu.memory_space<vmem>>, vector<1x32xf32>
    %6 = vector.broadcast %5 : vector<1x32xf32> to vector<16x32xf32>
    %7 = arith.addf %4, %6 : vector<16x32xf32>
    %c0_6 = arith.constant 0 : index
    %c0_7 = arith.constant 0 : index
    %8 = vector.load %arg5[%c0_6, %c0_7] : memref<1x32xf32, #tpu.memory_space<vmem>>, vector<1x32xf32>
    %c0_8 = arith.constant 0 : index
    %c0_9 = arith.constant 0 : index
    %9 = vector.load %arg6[%c0_8, %c0_9] : memref<1x32xf32, #tpu.memory_space<vmem>>, vector<1x32xf32>
    %cst_10 = arith.constant dense<0.000000e+00> : vector<16xf32>
    %10 = vector.multi_reduction <add>, %7, %cst_10 [1] : vector<16x32xf32> to vector<16xf32>
    %11 = vector.shape_cast %10 : vector<16xf32> to vector<16x1xf32>
    %cst_11 = arith.constant 3.200000e+01 : f32
    %12 = vector.broadcast %cst_11 : f32 to vector<16x1xf32>
    %13 = arith.divf %11, %12 : vector<16x1xf32>
    %14 = vector.broadcast %13 : vector<16x1xf32> to vector<16x32xf32>
    %15 = arith.subf %7, %14 : vector<16x32xf32>
    %16 = arith.mulf %15, %15 : vector<16x32xf32>
    %cst_12 = arith.constant dense<0.000000e+00> : vector<16xf32>
    %17 = vector.multi_reduction <add>, %16, %cst_12 [1] : vector<16x32xf32> to vector<16xf32>
    %18 = vector.shape_cast %17 : vector<16xf32> to vector<16x1xf32>
    %cst_13 = arith.constant 3.200000e+01 : f32
    %19 = vector.broadcast %cst_13 : f32 to vector<16x1xf32>
    %20 = arith.divf %18, %19 : vector<16x1xf32>
    %21 = vector.broadcast %13 : vector<16x1xf32> to vector<16x32xf32>
    %22 = arith.subf %7, %21 : vector<16x32xf32>
    %cst_14 = arith.constant 9.99999974E-6 : f32
    %23 = vector.broadcast %cst_14 : f32 to vector<16x1xf32>
    %24 = arith.addf %20, %23 : vector<16x1xf32>
    %25 = math.rsqrt %24 : vector<16x1xf32>
    %26 = vector.broadcast %25 : vector<16x1xf32> to vector<16x32xf32>
    %27 = arith.mulf %22, %26 : vector<16x32xf32>
    %28 = vector.broadcast %8 : vector<1x32xf32> to vector<16x32xf32>
    %29 = arith.mulf %27, %28 : vector<16x32xf32>
    %30 = vector.broadcast %9 : vector<1x32xf32> to vector<16x32xf32>
    %31 = arith.addf %29, %30 : vector<16x32xf32>
    %32 = arith.truncf %31 : vector<16x32xf32> to vector<16x32xbf16>
    %c0_15 = arith.constant 0 : index
    %c0_16 = arith.constant 0 : index
    %33 = vector.load %arg7[%c0_15, %c0_16] : memref<32x96xbf16, #tpu.memory_space<vmem>>, vector<32x96xbf16>
    %cst_17 = arith.constant dense<0.000000e+00> : vector<16x96xf32>
    %34 = tpu.matmul %32, %33, %cst_17 {dimension_numbers = #tpu.dot_dimension_numbers<[1], [0], [0], [1], [0, 0, 1, 1], [], []>} : vector<16x32xbf16>, vector<32x96xbf16>, vector<16x96xf32> -> vector<16x96xf32>
    %c0_18 = arith.constant 0 : index
    %c0_19 = arith.constant 0 : index
    %c0_20 = arith.constant 0 : index
    %35 = vector.load %arg8[%c0_18, %c0_19, %c0_20] : memref<1x16x96xf32, #tpu.memory_space<vmem>>, vector<1x16x96xf32>
    %36 = vector.shape_cast %35 : vector<1x16x96xf32> to vector<16x96xf32>
    %37 = vector.shape_cast %34 : vector<16x96xf32> to vector<1x16x96xf32>
    tpu.vector_store %arg8[%c0_18, %c0_19, %c0_20], %37 {strides = array<i32>} : memref<1x16x96xf32, #tpu.memory_space<vmem>>, vector<1x16x96xf32>,
    return
  }
  func.func @transform_0(%arg0: i32, %arg1: i32) -> (i32, i32, i32) {
    %c0_i32 = arith.constant 0 : i32
    %c0_i32_0 = arith.constant 0 : i32
    return %arg0, %arg1, %c0_i32 : i32, i32, i32
  }
  func.func @transform_1(%arg0: i32, %arg1: i32) -> (i32, i32) {
    %c0_i32 = arith.constant 0 : i32
    %c0_i32_0 = arith.constant 0 : i32
    %c0_i32_1 = arith.constant 0 : i32
    return %c0_i32, %c0_i32_0 : i32, i32
  }
  func.func @transform_2(%arg0: i32, %arg1: i32) -> (i32, i32) {
    %c0_i32 = arith.constant 0 : i32
    %c0_i32_0 = arith.constant 0 : i32
    %c0_i32_1 = arith.constant 0 : i32
    return %c0_i32, %c0_i32_0 : i32, i32
  }
  func.func @transform_3(%arg0: i32, %arg1: i32) -> (i32, i32) {
    %c0_i32 = arith.constant 0 : i32
    %c0_i32_0 = arith.constant 0 : i32
    %c0_i32_1 = arith.constant 0 : i32
    return %c0_i32, %c0_i32_0 : i32, i32
  }
  func.func @transform_4(%arg0: i32, %arg1: i32) -> (i32, i32) {
    %c0_i32 = arith.constant 0 : i32
    %c0_i32_0 = arith.constant 0 : i32
    %c0_i32_1 = arith.constant 0 : i32
    return %c0_i32, %c0_i32_0 : i32, i32
  }
  func.func @transform_5(%arg0: i32, %arg1: i32) -> (i32, i32) {
    %c0_i32 = arith.constant 0 : i32
    %c0_i32_0 = arith.constant 0 : i32
    %c0_i32_1 = arith.constant 0 : i32
    return %c0_i32, %c0_i32_0 : i32, i32
  }
  func.func @transform_6(%arg0: i32, %arg1: i32) -> (i32, i32, i32) {
    %c0_i32 = arith.constant 0 : i32
    %c0_i32_0 = arith.constant 0 : i32
    return %arg0, %arg1, %c0_i32 : i32, i32, i32
  }
}

module attributes {stable_mosaic.version = 11 : i64} {
  func.func @_attn_kernel(%arg0: i32, %arg1: i32, %arg2: memref<1x16x32xf32, #tpu.memory_space<vmem>>, %arg3: memref<1x16x32xf32, #tpu.memory_space<vmem>>, %arg4: memref<1x16x32xf32, #tpu.memory_space<vmem>>, %arg5: memref<1x128x1xi32, #tpu.memory_space<vmem>>, %arg6: memref<1x128x3xf32, #tpu.memory_space<vmem>>, %arg7: memref<1x16x8xf32, #tpu.memory_space<vmem>>, %arg8: memref<3x32xbf16, #tpu.memory_space<vmem>>, %arg9: memref<1x32xf32, #tpu.memory_space<vmem>>, %arg10: memref<32x32xbf16, #tpu.memory_space<vmem>>, %arg11: memref<1x32xf32, #tpu.memory_space<vmem>>, %arg12: memref<32x8xbf16, #tpu.memory_space<vmem>>, %arg13: memref<1x8xf32, #tpu.memory_space<vmem>>, %arg14: memref<1x8xf32, #tpu.memory_space<vmem>>, %arg15: memref<1x8xf32, #tpu.memory_space<vmem>>, %arg16: memref<1x16x8xf32, #tpu.memory_space<vmem>>, %arg17: memref<1x16x8xf32, #tpu.memory_space<vmem>>) attributes {dimension_semantics = [#tpu.dimension_semantics<parallel>, #tpu.dimension_semantics<parallel>], iteration_bounds = array<i64: 2, 1>, scalar_prefetch = 0 : i64, scratch_operands = 0 : i64, tpu.core_type = #tpu.core_type<tc>, window_params = [{transform_indices = @transform_0, window_bounds = array<i64: 1, 16, 32>}, {transform_indices = @transform_1, window_bounds = array<i64: 1, 16, 32>}, {transform_indices = @transform_2, window_bounds = array<i64: 1, 16, 32>}, {transform_indices = @transform_3, window_bounds = array<i64: 1, 128, 1>}, {transform_indices = @transform_4, window_bounds = array<i64: 1, 128, 3>}, {transform_indices = @transform_5, window_bounds = array<i64: 1, 16, 8>}, {pipeline_mode = #tpu.pipeline_mode<synchronous>, transform_indices = @transform_6, window_bounds = array<i64: 3, 32>}, {pipeline_mode = #tpu.pipeline_mode<synchronous>, transform_indices = @transform_7, window_bounds = array<i64: 1, 32>}, {pipeline_mode = #tpu.pipeline_mode<synchronous>, transform_indices = @transform_8, window_bounds = array<i64: 32, 32>}, {pipeline_mode = #tpu.pipeline_mode<synchronous>, transform_indices = @transform_9, window_bounds = array<i64: 1, 32>}, {pipeline_mode = #tpu.pipeline_mode<synchronous>, transform_indices = @transform_10, window_bounds = array<i64: 32, 8>}, {pipeline_mode = #tpu.pipeline_mode<synchronous>, transform_indices = @transform_11, window_bounds = array<i64: 1, 8>}, {pipeline_mode = #tpu.pipeline_mode<synchronous>, transform_indices = @transform_12, window_bounds = array<i64: 1, 8>}, {pipeline_mode = #tpu.pipeline_mode<synchronous>, transform_indices = @transform_13, window_bounds = array<i64: 1, 8>}, {transform_indices = @transform_14, window_bounds = array<i64: 1, 16, 8>}, {transform_indices = @transform_15, window_bounds = array<i64: 1, 16, 8>}]} {
    %c0 = arith.constant 0 : index
    %c0_0 = arith.constant 0 : index
    %c0_1 = arith.constant 0 : index
    %0 = vector.load %arg6[%c0, %c0_0, %c0_1] : memref<1x128x3xf32, #tpu.memory_space<vmem>>, vector<1x128x3xf32>
    %1 = vector.shape_cast %0 : vector<1x128x3xf32> to vector<128x3xf32>
    %2 = arith.truncf %1 : vector<128x3xf32> to vector<128x3xbf16>
    %c0_2 = arith.constant 0 : index
    %c0_3 = arith.constant 0 : index
    %3 = vector.load %arg8[%c0_2, %c0_3] : memref<3x32xbf16, #tpu.memory_space<vmem>>, vector<3x32xbf16>
    %cst = arith.constant dense<0.000000e+00> : vector<128x32xf32>
    %4 = tpu.matmul %2, %3, %cst {dimension_numbers = #tpu.dot_dimension_numbers<[1], [0], [0], [1], [0, 0, 1, 1], [], []>} : vector<128x3xbf16>, vector<3x32xbf16>, vector<128x32xf32> -> vector<128x32xf32>
    %c0_4 = arith.constant 0 : index
    %c0_5 = arith.constant 0 : index
    %5 = vector.load %arg9[%c0_4, %c0_5] : memref<1x32xf32, #tpu.memory_space<vmem>>, vector<1x32xf32>
    %6 = vector.broadcast %5 : vector<1x32xf32> to vector<128x32xf32>
    %7 = arith.addf %4, %6 : vector<128x32xf32>
    %cst_6 = arith.constant 0.000000e+00 : f32
    %8 = vector.broadcast %cst_6 : f32 to vector<128x32xf32>
    %9 = arith.maximumf %7, %8 : vector<128x32xf32>
    %10 = arith.truncf %9 : vector<128x32xf32> to vector<128x32xbf16>
    %c0_7 = arith.constant 0 : index
    %c0_8 = arith.constant 0 : index
    %11 = vector.load %arg10[%c0_7, %c0_8] : memref<32x32xbf16, #tpu.memory_space<vmem>>, vector<32x32xbf16>
    %cst_9 = arith.constant dense<0.000000e+00> : vector<128x32xf32>
    %12 = tpu.matmul %10, %11, %cst_9 {dimension_numbers = #tpu.dot_dimension_numbers<[1], [0], [0], [1], [0, 0, 1, 1], [], []>} : vector<128x32xbf16>, vector<32x32xbf16>, vector<128x32xf32> -> vector<128x32xf32>
    %c0_10 = arith.constant 0 : index
    %c0_11 = arith.constant 0 : index
    %13 = vector.load %arg11[%c0_10, %c0_11] : memref<1x32xf32, #tpu.memory_space<vmem>>, vector<1x32xf32>
    %14 = vector.broadcast %13 : vector<1x32xf32> to vector<128x32xf32>
    %15 = arith.addf %12, %14 : vector<128x32xf32>
    %c0_12 = arith.constant 0 : index
    %c0_13 = arith.constant 0 : index
    %c0_14 = arith.constant 0 : index
    %16 = vector.load %arg5[%c0_12, %c0_13, %c0_14] : memref<1x128x1xi32, #tpu.memory_space<vmem>>, vector<1x128x1xi32>
    %17 = vector.shape_cast %16 : vector<1x128x1xi32> to vector<128x1xi32>
    %18 = tpu.iota {dimensions = array<i32: 1>} : vector<128x16xi32>
    %19 = vector.broadcast %17 : vector<128x1xi32> to vector<128x16xi32>
    %20 = arith.cmpi eq, %18, %19 : vector<128x16xi32>
    %21 = arith.extui %20 : vector<128x16xi1> to vector<128x16xi32>
    %22 = arith.sitofp %21 : vector<128x16xi32> to vector<128x16xf32>
    %23 = arith.truncf %22 : vector<128x16xf32> to vector<128x16xbf16>
    %c0_15 = arith.constant 0 : index
    %c0_16 = arith.constant 0 : index
    %c0_17 = arith.constant 0 : index
    %24 = vector.load %arg3[%c0_15, %c0_16, %c0_17] : memref<1x16x32xf32, #tpu.memory_space<vmem>>, vector<1x16x32xf32>
    %25 = vector.shape_cast %24 : vector<1x16x32xf32> to vector<16x32xf32>
    %26 = arith.truncf %25 : vector<16x32xf32> to vector<16x32xbf16>
    %cst_18 = arith.constant dense<0.000000e+00> : vector<128x32xf32>
    %27 = tpu.matmul %23, %26, %cst_18 {dimension_numbers = #tpu.dot_dimension_numbers<[1], [0], [0], [1], [0, 0, 1, 1], [], []>} : vector<128x16xbf16>, vector<16x32xbf16>, vector<128x32xf32> -> vector<128x32xf32>
    %c0_19 = arith.constant 0 : index
    %c0_20 = arith.constant 0 : index
    %c0_21 = arith.constant 0 : index
    %28 = vector.load %arg4[%c0_19, %c0_20, %c0_21] : memref<1x16x32xf32, #tpu.memory_space<vmem>>, vector<1x16x32xf32>
    %29 = vector.shape_cast %28 : vector<1x16x32xf32> to vector<16x32xf32>
    %30 = arith.truncf %29 : vector<16x32xf32> to vector<16x32xbf16>
    %cst_22 = arith.constant dense<0.000000e+00> : vector<128x32xf32>
    %31 = tpu.matmul %23, %30, %cst_22 {dimension_numbers = #tpu.dot_dimension_numbers<[1], [0], [0], [1], [0, 0, 1, 1], [], []>} : vector<128x16xbf16>, vector<16x32xbf16>, vector<128x32xf32> -> vector<128x32xf32>
    %32 = arith.addf %27, %15 : vector<128x32xf32>
    %33 = vector.shape_cast %32 : vector<128x32xf32> to vector<16x8x32xf32>
    %34 = arith.addf %31, %15 : vector<128x32xf32>
    %35 = vector.shape_cast %34 : vector<128x32xf32> to vector<16x8x32xf32>
    %c0_23 = arith.constant 0 : index
    %c0_24 = arith.constant 0 : index
    %c0_25 = arith.constant 0 : index
    %36 = vector.load %arg2[%c0_23, %c0_24, %c0_25] : memref<1x16x32xf32, #tpu.memory_space<vmem>>, vector<1x16x32xf32>
    %37 = vector.shape_cast %36 : vector<1x16x32xf32> to vector<16x32xf32>
    %38 = vector.shape_cast %37 : vector<16x32xf32> to vector<16x1x32xf32>
    %39 = vector.broadcast %38 : vector<16x1x32xf32> to vector<16x8x32xf32>
    %40 = arith.mulf %39, %33 : vector<16x8x32xf32>
    %cst_26 = arith.constant dense<0.000000e+00> : vector<16x8xf32>
    %41 = vector.multi_reduction <add>, %40, %cst_26 [2] : vector<16x8x32xf32> to vector<16x8xf32>
    %cst_27 = arith.constant 0.176776692 : f32
    %42 = vector.broadcast %cst_27 : f32 to vector<16x8xf32>
    %43 = arith.mulf %41, %42 : vector<16x8xf32>
    %cst_28 = arith.constant dense<0xFF800000> : vector<16xf32>
    %44 = vector.multi_reduction <maximumf>, %43, %cst_28 [1] : vector<16x8xf32> to vector<16xf32>
    %45 = vector.shape_cast %44 : vector<16xf32> to vector<16x1xf32>
    %46 = vector.broadcast %45 : vector<16x1xf32> to vector<16x8xf32>
    %47 = arith.subf %43, %46 : vector<16x8xf32>
    %48 = math.exp %47 : vector<16x8xf32>
    %cst_29 = arith.constant dense<0.000000e+00> : vector<16xf32>
    %49 = vector.multi_reduction <add>, %48, %cst_29 [1] : vector<16x8xf32> to vector<16xf32>
    %50 = vector.shape_cast %49 : vector<16xf32> to vector<16x1xf32>
    %51 = tpu.reciprocal %50 {approx = true} : vector<16x1xf32> -> vector<16x1xf32>
    %52 = vector.broadcast %51 : vector<16x1xf32> to vector<16x8xf32>
    %53 = arith.mulf %48, %52 : vector<16x8xf32>
    %c0_30 = arith.constant 0 : index
    %c0_31 = arith.constant 0 : index
    %c0_32 = arith.constant 0 : index
    %54 = vector.load %arg17[%c0_30, %c0_31, %c0_32] : memref<1x16x8xf32, #tpu.memory_space<vmem>>, vector<1x16x8xf32>
    %55 = vector.shape_cast %54 : vector<1x16x8xf32> to vector<16x8xf32>
    %56 = vector.shape_cast %53 : vector<16x8xf32> to vector<1x16x8xf32>
    tpu.vector_store %arg17[%c0_30, %c0_31, %c0_32], %56 {strides = array<i32>} : memref<1x16x8xf32, #tpu.memory_space<vmem>>, vector<1x16x8xf32>,
    %57 = vector.shape_cast %53 : vector<16x8xf32> to vector<16x8x1xf32>
    %58 = vector.broadcast %57 : vector<16x8x1xf32> to vector<16x8x32xf32>
    %59 = arith.mulf %58, %35 : vector<16x8x32xf32>
    %cst_33 = arith.constant dense<0.000000e+00> : vector<16x32xf32>
    %60 = vector.multi_reduction <add>, %59, %cst_33 [1] : vector<16x8x32xf32> to vector<16x32xf32>
    %61 = arith.truncf %60 : vector<16x32xf32> to vector<16x32xbf16>
    %c0_34 = arith.constant 0 : index
    %c0_35 = arith.constant 0 : index
    %62 = vector.load %arg12[%c0_34, %c0_35] : memref<32x8xbf16, #tpu.memory_space<vmem>>, vector<32x8xbf16>
    %cst_36 = arith.constant dense<0.000000e+00> : vector<16x8xf32>
    %63 = tpu.matmul %61, %62, %cst_36 {dimension_numbers = #tpu.dot_dimension_numbers<[1], [0], [0], [1], [0, 0, 1, 1], [], []>} : vector<16x32xbf16>, vector<32x8xbf16>, vector<16x8xf32> -> vector<16x8xf32>
    %c0_37 = arith.constant 0 : index
    %c0_38 = arith.constant 0 : index
    %64 = vector.load %arg13[%c0_37, %c0_38] : memref<1x8xf32, #tpu.memory_space<vmem>>, vector<1x8xf32>
    %65 = vector.broadcast %64 : vector<1x8xf32> to vector<16x8xf32>
    %66 = arith.addf %63, %65 : vector<16x8xf32>
    %c0_39 = arith.constant 0 : index
    %c0_40 = arith.constant 0 : index
    %67 = vector.load %arg14[%c0_39, %c0_40] : memref<1x8xf32, #tpu.memory_space<vmem>>, vector<1x8xf32>
    %c0_41 = arith.constant 0 : index
    %c0_42 = arith.constant 0 : index
    %68 = vector.load %arg15[%c0_41, %c0_42] : memref<1x8xf32, #tpu.memory_space<vmem>>, vector<1x8xf32>
    %cst_43 = arith.constant dense<0.000000e+00> : vector<16xf32>
    %69 = vector.multi_reduction <add>, %66, %cst_43 [1] : vector<16x8xf32> to vector<16xf32>
    %70 = vector.shape_cast %69 : vector<16xf32> to vector<16x1xf32>
    %cst_44 = arith.constant 8.000000e+00 : f32
    %71 = vector.broadcast %cst_44 : f32 to vector<16x1xf32>
    %72 = arith.divf %70, %71 : vector<16x1xf32>
    %73 = vector.broadcast %72 : vector<16x1xf32> to vector<16x8xf32>
    %74 = arith.subf %66, %73 : vector<16x8xf32>
    %75 = arith.mulf %74, %74 : vector<16x8xf32>
    %cst_45 = arith.constant dense<0.000000e+00> : vector<16xf32>
    %76 = vector.multi_reduction <add>, %75, %cst_45 [1] : vector<16x8xf32> to vector<16xf32>
    %77 = vector.shape_cast %76 : vector<16xf32> to vector<16x1xf32>
    %cst_46 = arith.constant 8.000000e+00 : f32
    %78 = vector.broadcast %cst_46 : f32 to vector<16x1xf32>
    %79 = arith.divf %77, %78 : vector<16x1xf32>
    %80 = vector.broadcast %72 : vector<16x1xf32> to vector<16x8xf32>
    %81 = arith.subf %66, %80 : vector<16x8xf32>
    %cst_47 = arith.constant 9.99999974E-6 : f32
    %82 = vector.broadcast %cst_47 : f32 to vector<16x1xf32>
    %83 = arith.addf %79, %82 : vector<16x1xf32>
    %84 = math.rsqrt %83 : vector<16x1xf32>
    %85 = vector.broadcast %84 : vector<16x1xf32> to vector<16x8xf32>
    %86 = arith.mulf %81, %85 : vector<16x8xf32>
    %87 = vector.broadcast %67 : vector<1x8xf32> to vector<16x8xf32>
    %88 = arith.mulf %86, %87 : vector<16x8xf32>
    %89 = vector.broadcast %68 : vector<1x8xf32> to vector<16x8xf32>
    %90 = arith.addf %88, %89 : vector<16x8xf32>
    %c0_48 = arith.constant 0 : index
    %c0_49 = arith.constant 0 : index
    %c0_50 = arith.constant 0 : index
    %91 = vector.load %arg7[%c0_48, %c0_49, %c0_50] : memref<1x16x8xf32, #tpu.memory_space<vmem>>, vector<1x16x8xf32>
    %92 = vector.shape_cast %91 : vector<1x16x8xf32> to vector<16x8xf32>
    %93 = arith.addf %90, %92 : vector<16x8xf32>
    %c0_51 = arith.constant 0 : index
    %c0_52 = arith.constant 0 : index
    %c0_53 = arith.constant 0 : index
    %94 = vector.load %arg16[%c0_51, %c0_52, %c0_53] : memref<1x16x8xf32, #tpu.memory_space<vmem>>, vector<1x16x8xf32>
    %95 = vector.shape_cast %94 : vector<1x16x8xf32> to vector<16x8xf32>
    %96 = vector.shape_cast %93 : vector<16x8xf32> to vector<1x16x8xf32>
    tpu.vector_store %arg16[%c0_51, %c0_52, %c0_53], %96 {strides = array<i32>} : memref<1x16x8xf32, #tpu.memory_space<vmem>>, vector<1x16x8xf32>,
    return
  }
  func.func @transform_0(%arg0: i32, %arg1: i32) -> (i32, i32, i32) {
    %c0_i32 = arith.constant 0 : i32
    %c0_i32_0 = arith.constant 0 : i32
    return %arg0, %arg1, %c0_i32 : i32, i32, i32
  }
  func.func @transform_1(%arg0: i32, %arg1: i32) -> (i32, i32, i32) {
    %c0_i32 = arith.constant 0 : i32
    %c0_i32_0 = arith.constant 0 : i32
    %c0_i32_1 = arith.constant 0 : i32
    return %arg0, %c0_i32, %c0_i32_0 : i32, i32, i32
  }
  func.func @transform_2(%arg0: i32, %arg1: i32) -> (i32, i32, i32) {
    %c0_i32 = arith.constant 0 : i32
    %c0_i32_0 = arith.constant 0 : i32
    %c0_i32_1 = arith.constant 0 : i32
    return %arg0, %c0_i32, %c0_i32_0 : i32, i32, i32
  }
  func.func @transform_3(%arg0: i32, %arg1: i32) -> (i32, i32, i32) {
    %c0_i32 = arith.constant 0 : i32
    %c0_i32_0 = arith.constant 0 : i32
    return %arg0, %arg1, %c0_i32 : i32, i32, i32
  }
  func.func @transform_4(%arg0: i32, %arg1: i32) -> (i32, i32, i32) {
    %c0_i32 = arith.constant 0 : i32
    %c0_i32_0 = arith.constant 0 : i32
    return %arg0, %arg1, %c0_i32 : i32, i32, i32
  }
  func.func @transform_5(%arg0: i32, %arg1: i32) -> (i32, i32, i32) {
    %c0_i32 = arith.constant 0 : i32
    %c0_i32_0 = arith.constant 0 : i32
    return %arg0, %arg1, %c0_i32 : i32, i32, i32
  }
  func.func @transform_6(%arg0: i32, %arg1: i32) -> (i32, i32) {
    %c0_i32 = arith.constant 0 : i32
    %c0_i32_0 = arith.constant 0 : i32
    %c0_i32_1 = arith.constant 0 : i32
    return %c0_i32, %c0_i32_0 : i32, i32
  }
  func.func @transform_7(%arg0: i32, %arg1: i32) -> (i32, i32) {
    %c0_i32 = arith.constant 0 : i32
    %c0_i32_0 = arith.constant 0 : i32
    %c0_i32_1 = arith.constant 0 : i32
    return %c0_i32, %c0_i32_0 : i32, i32
  }
  func.func @transform_8(%arg0: i32, %arg1: i32) -> (i32, i32) {
    %c0_i32 = arith.constant 0 : i32
    %c0_i32_0 = arith.constant 0 : i32
    %c0_i32_1 = arith.constant 0 : i32
    return %c0_i32, %c0_i32_0 : i32, i32
  }
  func.func @transform_9(%arg0: i32, %arg1: i32) -> (i32, i32) {
    %c0_i32 = arith.constant 0 : i32
    %c0_i32_0 = arith.constant 0 : i32
    %c0_i32_1 = arith.constant 0 : i32
    return %c0_i32, %c0_i32_0 : i32, i32
  }
  func.func @transform_10(%arg0: i32, %arg1: i32) -> (i32, i32) {
    %c0_i32 = arith.constant 0 : i32
    %c0_i32_0 = arith.constant 0 : i32
    %c0_i32_1 = arith.constant 0 : i32
    return %c0_i32, %c0_i32_0 : i32, i32
  }
  func.func @transform_11(%arg0: i32, %arg1: i32) -> (i32, i32) {
    %c0_i32 = arith.constant 0 : i32
    %c0_i32_0 = arith.constant 0 : i32
    %c0_i32_1 = arith.constant 0 : i32
    return %c0_i32, %c0_i32_0 : i32, i32
  }
  func.func @transform_12(%arg0: i32, %arg1: i32) -> (i32, i32) {
    %c0_i32 = arith.constant 0 : i32
    %c0_i32_0 = arith.constant 0 : i32
    %c0_i32_1 = arith.constant 0 : i32
    return %c0_i32, %c0_i32_0 : i32, i32
  }
  func.func @transform_13(%arg0: i32, %arg1: i32) -> (i32, i32) {
    %c0_i32 = arith.constant 0 : i32
    %c0_i32_0 = arith.constant 0 : i32
    %c0_i32_1 = arith.constant 0 : i32
    return %c0_i32, %c0_i32_0 : i32, i32
  }
  func.func @transform_14(%arg0: i32, %arg1: i32) -> (i32, i32, i32) {
    %c0_i32 = arith.constant 0 : i32
    %c0_i32_0 = arith.constant 0 : i32
    return %arg0, %arg1, %c0_i32 : i32, i32, i32
  }
  func.func @transform_15(%arg0: i32, %arg1: i32) -> (i32, i32, i32) {
    %c0_i32 = arith.constant 0 : i32
    %c0_i32_0 = arith.constant 0 : i32
    return %arg0, %arg1, %c0_i32 : i32, i32, i32
  }
}

</mosaic_0001>

<bundles_post_ra>
// kernel: neg.1
= control target key start
LH: loop header
LB: loop body
LE: loop exit
PB: predicated region body
PF: predicated region fallthrough
CT: control target
= control target key end

     0   :  { %s72_s0 = inlined_call_operand.vmem [shape: f32[2,16,16], index: 0, kind: input, shape index: {}]   ;;  %s73_s1 = inlined_call_operand.vmem [shape: f32[2,16,16], index: 1, kind: output, shape index: {}]  }
   0x1   :  { %v2_v0 = vld [vmem:[%s72_s0] sm:$0xff]  ;;  %v32_v1 = vld [vmem:[%s72_s0 + $0x10] sm:$0xff]  ;;  %v34_v2 = vld [vmem:[%s72_s0 + $0x8] sm:$0xff] }
   0x2   :  { %v5_v3 = vxor.u32 2147483648, %v2_v0  ;;  %v12_v4 = vxor.u32 2147483648, %v32_v1  ;;  %v20_v5 = vxor.u32 2147483648, %v34_v2  ;;  %v36_v6 = vld [vmem:[%s72_s0 + $0x18] sm:$0xff] }
   0x3   :  { %v28_v7 = vxor.u32 2147483648, %v36_v6 }
   0x4   :  { %7 = vst [vmem:[%s73_s1] sm:$0xff] %v5_v3  ;;  %33 = vst [vmem:[%s73_s1 + $0x10] sm:$0xff] %v12_v4 }
   0x5   :  { %35 = vst [vmem:[%s73_s1 + $0x8] sm:$0xff] %v20_v5  ;;  %37 = vst [vmem:[%s73_s1 + $0x18] sm:$0xff] %v28_v7 }

// kernel: _lambda_.3
= control target key start
LH: loop header
LB: loop body
LE: loop exit
PB: predicated region body
PF: predicated region fallthrough
CT: control target
= control target key end

     0   :  { %s556_s12 = smov 0   ;;  %s558_s13 = smov 0   ;;  %s600_s0 = inlined_call_operand.vmem [shape: f32[2,16,3], index: 0, kind: input, shape index: {}]   ;;  %s601_s1 = inlined_call_operand.vmem [shape: f32[2,3,16], index: 1, kind: input, shape index: {}]   ;;  %s602_s2 = inlined_call_operand.vmem [shape: f32[2,1,16], index: 2, kind: input, shape index: {}]   ;;  %s603_s3 = inlined_call_operand.vmem [shape: f32[2,16,16], index: 3, kind: output, shape index: {}]  }
   0x1   :  { %s560_s14 = smov 0  }
   0x2 LB: > { %s25_s15 = sadd.s32 1, %s530_s13  ;;  %p466_p0 = scmp.ge.s32.totalorder %s534_s14, 1  ;;  %s534_s14 = sphi %s560_s14, %s13_s14   ;;  %s530_s13 = sphi %s558_s13, %s605_s13   ;;  %s526_s12 = sphi %s556_s12, %s604_s12  }
   0x3   : > { %p27_p1 = scmp.ge.s32.totalorder %s25_s15, 2  ;;  %p175_p2 = scmp.lt.s32.totalorder %s534_s14, 3 }
   0x5   : > { %s607_s15 = smov (%p27_p1, %s25_s15), 0  ;;  %p176_p3 = pnand %p466_p0, %p175_p2 }
   0x6   : > { %p215_p4 = scmp.lt.s32.totalorder (!%p176_p3), %s526_s12, 1  ;;  %vm251_vm0 = vcmask (!%p176_p3), 1042432   ;;  %vm244_vm1 = vcmask (!%p176_p3), 23552   ;;  %vm351_vm2 = vcmask (!%p176_p3), 130048  }
   0x7   : > { %179 = sbr.rel (%p176_p3) target bundleno = 238 (0xee), region = 32 }
   0xe   : > { %s609_s12 = smov (!%p215_p4, %s526_s12), 1 }
   0xf   : > { %s469_s16 = sshll.u32 %s609_s12, 2  ;;  %s478_s17 = sshll.u32 %s609_s12, 4 }
  0x10   : > { %s227_s20 = scalar_lea.vmem %s601_s1, %s469_s16  ;;  %s222_s23 = scalar_lea.vmem %s600_s0, %s478_s17 }
  0x11   : > { %v243_v0 = vld [vmem:[%s227_s20] sm:$0x7]  ;;  %v242_v2 = vld [vmem:[%s222_s23 + $0x8] sm:$0xff]  ;;  %s230_s26 = scalar_lea.vmem %s602_s2, %s609_s12  ;;  %s239_s29 = scalar_lea.vmem %s603_s3, %s478_s17 }
  0x12   : > { %v241_v1 = vld [vmem:[%s222_s23] sm:$0xff]  ;;  %483 = vmatprep.subr.msk.mxu0 %vm251_vm0, %v243_v0  ;;  %v331_v4 = vmul.f32 %v242_v2, %v242_v2 }
  0x13   : > { %485 = vmatprep.mubr.msk.f32.mxu0 %vm244_vm1, %v241_v1  ;;  %v330_v3 = vmul.f32 %v241_v1, %v241_v1  ;;  %484 = vmatpush3.msk.msra.mxu0 %vm251_vm0, %v243_v0  ;;  %v475_v9 = vld [vmem:[%s230_s26] ss:$0 sm:$0xff] }
  0x14   : > { %486 = vmatmul.mubr.msk.f32.vlgmr.msra.gmra.mrb[0].mxu0 %vm244_vm1, %v242_v2  ;;  %v335_v6 = vsel %vm244_vm1, %v331_v4, 0.0 }
  0x15   : > { %v332_v5 = vsel %vm244_vm1, %v330_v3, 0.0 }
  0x16   : > { %333 = vadd.xlane.f32.xlu0 %v332_v5 }
  0x1a   : > { %336 = vadd.xlane.f32.xlu0 %v335_v6 }
  0xa3   : > { %v334_v7 = vpop.xlane.xlu0 %333 }
  0xa4   : > { %v345_v14 = vadd.f32 %v475_v9, %v334_v7 }
  0xa7   : > { %v337_v8 = vpop.xlane.xlu0 %336 }
  0xa8   : > { %v346_v10 = vadd.f32 %v475_v9, %v337_v8 }
  0xe7   : > { %v487_v11 = vpop.f32.mrb[0].mxu0 }
  0xe8   : > { %v348_v12 = vmul.f32 2.0, %v487_v11  ;;  %v321_v13 = vpop.f32.mrb[1].mxu0 }
  0xe9   : > { %v347_v15 = vmul.f32 2.0, %v321_v13 }
  0xea   : > { %v350_v16 = vsub.f32 %v346_v10, %v348_v12 }
  0xeb   : > { %v349_v17 = vsub.f32 %v345_v14, %v347_v15 }
  0xec   : > { %353 = vst.msk [vmem:[%s239_s29 + $0x8] sm:$0xff] %vm351_vm2, %v350_v16 }
  0xed   : > { %352 = vst.msk [vmem:[%s239_s29] sm:$0xff] %vm351_vm2, %v349_v17 }
  0xee PF: > { %s13_s14 = sadd.s32 1, %s534_s14   ;;  %s604_s12 = smov %s530_s13 }
  0xef   : > { %p10_p5 = scmp.ge.s32.totalorder %s13_s14, 4   ;;  %s605_s13 = smov %s607_s15 }
  0xf1   :  { %12 = sbr.rel (!%p10_p5) target bundleno = 2 (0x2), region = 68 }

// kernel: _lambda_.4
= control target key start
LH: loop header
LB: loop body
LE: loop exit
PB: predicated region body
PF: predicated region fallthrough
CT: control target
= control target key end

     0   :  { %s681_s21 = smov 0   ;;  %s683_s22 = smov 0   ;;  %s744_s0 = inlined_call_operand.vmem [shape: f32[2,16,8], index: 0, kind: input, shape index: {}]   ;;  %s745_s1 = inlined_call_operand.vmem [shape: bf16[8,32], index: 1, kind: input, shape index: {}]   ;;  %s746_s2 = inlined_call_operand.vmem [shape: f32[1,32], index: 2, kind: input, shape index: {}]   ;;  %s747_s3 = inlined_call_operand.vmem [shape: f32[1,32], index: 3, kind: input, shape index: {}]   ;;  %s748_s4 = inlined_call_operand.vmem [shape: f32[1,32], index: 4, kind: input, shape index: {}]   ;;  %s749_s5 = inlined_call_operand.vmem [shape: bf16[32,96], index: 5, kind: input, shape index: {}]   ;;  %s750_s6 = inlined_call_operand.vmem [shape: f32[2,16,96], index: 6, kind: output, shape index: {}]  }
   0x1   :  { %s685_s23 = smov 0  }
   0x2 LB: > { %s28_s24 = sadd.s32 1, %s638_s22  ;;  %p553_p0 = scmp.ge.s32.totalorder %s642_s23, 1  ;;  %s642_s23 = sphi %s685_s23, %s16_s23   ;;  %s638_s22 = sphi %s683_s22, %s752_s22   ;;  %s634_s21 = sphi %s681_s21, %s751_s21  }
   0x3   : > { %p30_p1 = scmp.ge.s32.totalorder %s28_s24, 2  ;;  %p233_p2 = scmp.lt.s32.totalorder %s642_s23, 3 }
   0x5   : > { %s754_s24 = smov (%p30_p1, %s28_s24), 0  ;;  %p234_p3 = pnand %p553_p0, %p233_p2 }
   0x6   : > { %v295_v0 = vld [vmem:[%s745_s1] sm:$0xf] (!%p234_p3)  ;;  %vm307_vm0 = vcmask (!%p234_p3), 1043456   ;;  %p272_p4 = scmp.lt.s32.totalorder (!%p234_p3), %s634_s21, 1  ;;  %v644_v1 = vmov (!%p234_p3), 0.0   ;;  %vm645_vm1 = vmmov (!%p234_p3), 0  }
   0x7   : > { %237 = sbr.rel (%p234_p3) target bundleno = 768 (0x300), region = 44  ;;  %574 = vmatprep.subr.bf16.mxu0 (!%p234_p3), %v644_v1  ;;  %v309_v2 = vsel (!%p234_p3), %vm307_vm0, %v295_v0, 0  ;;  %576 = vmatprep.mubr.msk.bf16.mxu0 (!%p234_p3), %vm645_vm1, %v644_v1  ;;  %vm303_vm2 = vcmask (!%p234_p3), 64512   ;;  %v558_v6 = vld [vmem:[%s746_s2] ss:$0 sm:$0xff] (!%p234_p3)  ;;  %vm354_vm3 = vcmask (!%p234_p3), 261120  }
   0x8   : > { %575 = vmatpush3.bf16.msra.mxu0 (!%p234_p3), %v309_v2  ;;  %580 = vmatprep.subr.bf16.mxu1 (!%p234_p3), %v644_v1  ;;  %v614_v25 = vld [vmem:[%s749_s5] sm:$0xff] (!%p234_p3)   ;;  %v615_v26 = vld [vmem:[%s749_s5 + $0x8] sm:$0xff] (!%p234_p3)   ;;  %vm459_vm4 = vcmask (!%p234_p3), 785408  }
   0x9   : > { %584 = vmatprep.mubr.msk.bf16.mxu1 (!%p234_p3), %vm645_vm1, %v644_v1  ;;  %581 = vmatpush3.bf16.msra.mxu1 (!%p234_p3), %v614_v25  ;;  %v560_v35 = vld [vmem:[%s747_s3] ss:$0 sm:$0xff] (!%p234_p3) }
   0xa   : > { %582 = vmatprep.subr.bf16.mxu1 (!%p234_p3), %v644_v1  ;;  %v561_v39 = vld [vmem:[%s748_s4] ss:$0 sm:$0xff] (!%p234_p3) }
   0xd   : > { %583 = vmatpush3.bf16.msra.mxu1 (!%p234_p3), %v615_v26 }
   0xe   : > { %s756_s21 = smov (!%p272_p4, %s634_s21), 1 }
   0xf   : > { %s567_s27 = sshll.u32 %s756_s21, 4 }
  0x10   : > { %s279_s30 = scalar_lea.vmem %s744_s0, %s567_s27  ;;  %s289_s19 = scalar_lea.vmem %s750_s6, %s567_s27 }
  0x11   : > { %v292_v3 = vld [vmem:[%s279_s30] sm:$0xff]  ;;  %v293_v4 = vld [vmem:[%s279_s30 + $0x8] sm:$0xff] }
  0x12   : > { %v294_v5 = vpack.c.bf16 %v293_v4, %v292_v3 }
  0x14   : > { %577 = vmatmul.mubr.msk.bf16.vlgmr.msra.gmra.mrb[0].mxu0 %vm303_vm2, %v294_v5 }
  0xe7   : > { %v345_v7 = vpop.f32.mrb[0].mxu0 }
  0xe8   : > { %v346_v8 = vadd.f32 %v558_v6, %v345_v7  ;;  %v578_v9 = vpop.f32.mrb[1].mxu0 }
  0xe9   : > { %v348_v10 = vpop.f32.mrb[2].mxu0 }
  0xea   : > { %v349_v11 = vadd.f32 %v558_v6, %v348_v10  ;;  %v579_v12 = vpop.f32.mrb[3].mxu0  ;;  %v355_v13 = vsel %vm354_vm3, %v346_v8, 0.0 }
  0xeb   : > { %356 = vadd.xlane.f32.xlu0 %v355_v13 }
  0xec   : > { %v358_v14 = vsel %vm354_vm3, %v349_v11, 0.0 }
  0xef   : > { %359 = vadd.xlane.f32.xlu0 %v358_v14 }
 0x178   : > { %v357_v15 = vpop.xlane.xlu0 %356 }
 0x179   : > { %v362_v16 = vmul.f32 0.03125, %v357_v15 }
 0x17b   : > { %v364_v17 = vsub.f32 %v346_v8, %v362_v16 }
 0x17c   : > { %v360_v18 = vpop.xlane.xlu0 %359 }
 0x17d   : > { %v363_v19 = vmul.f32 0.03125, %v360_v18  ;;  %v366_v20 = vmul.f32 %v364_v17, %v364_v17 }
 0x17f   : > { %v365_v21 = vsub.f32 %v349_v11, %v363_v19  ;;  %v368_v22 = vsel %vm354_vm3, %v366_v20, 0.0 }
 0x180   : > { %369 = vadd.xlane.f32.xlu1 %v368_v22 }
 0x181   : > { %v367_v23 = vmul.f32 %v365_v21, %v365_v21 }
 0x183   : > { %v371_v24 = vsel %vm354_vm3, %v367_v23, 0.0 }
 0x184   : > { %372 = vadd.xlane.f32.xlu1 %v371_v24 }
 0x20d   : > { %v370_v27 = vpop.xlane.xlu1 %369 }
 0x20e   : > { %v374_v28 = vmul.f32 0.03125, %v370_v27 }
 0x210   : > { %v376_v29 = vadd.f32 1e-05, %v374_v28 }
 0x211   : > { %v373_v30 = vpop.xlane.xlu1 %372 }
 0x212   : > { %616 = vrsqrt.f32 %v376_v29  ;;  %v375_v31 = vmul.f32 0.03125, %v373_v30 }
 0x214   : > { %v377_v32 = vadd.f32 1e-05, %v375_v31 }
 0x216   : > { %618 = vrsqrt.f32 %v377_v32 }
 0x21c   : > { %v617_v33 = vpop.eup %616 }
 0x21d   : > { %v380_v34 = vmul.f32 %v617_v33, %v364_v17 }
 0x21f   : > { %v388_v38 = vmul.f32 %v560_v35, %v380_v34 }
 0x220   : > { %v619_v36 = vpop.eup %618 }
 0x221   : > { %v381_v37 = vmul.f32 %v619_v36, %v365_v21  ;;  %v396_v41 = vadd.f32 %v561_v39, %v388_v38 }
 0x223   : > { %v389_v40 = vmul.f32 %v560_v35, %v381_v37 }
 0x225   : > { %v397_v42 = vadd.f32 %v561_v39, %v389_v40 }
 0x227   : > { %v398_v43 = vpack.c.bf16 %v397_v42, %v396_v41 }
 0x229   : > { %585 = vmatmul.mubr.msk.bf16.vlgmr.msra.gmra.mrb[0].mxu1 %vm354_vm3, %v398_v43 }
 0x2fc   : > { %v452_v44 = vpop.f32.mrb[0].mxu1 }
 0x2fd   : > { %460 = vst.msk [vmem:[%s289_s19] sm:$0xff] %vm459_vm4, %v452_v44  ;;  %v586_v45 = vpop.f32.mrb[1].mxu1 }
 0x2fe   : > { %v455_v46 = vpop.f32.mrb[2].mxu1 }
 0x2ff   : > { %461 = vst.msk [vmem:[%s289_s19 + $0x8] sm:$0xff] %vm459_vm4, %v455_v46  ;;  %v587_v47 = vpop.f32.mrb[3].mxu1 }
 0x300 PF: > { %s16_s23 = sadd.s32 1, %s642_s23   ;;  %s751_s21 = smov %s638_s22 }
 0x301   : > { %p13_p5 = scmp.ge.s32.totalorder %s16_s23, 4   ;;  %s752_s22 = smov %s754_s24 }
 0x303   :  { %15 = sbr.rel (!%p13_p5) target bundleno = 2 (0x2), region = 74 }

// kernel: _lambda_.5
= control target key start
LH: loop header
LB: loop body
LE: loop exit
PB: predicated region body
PF: predicated region fallthrough
CT: control target
= control target key end

     0   :  { %s3219_s18 = smov 0   ;;  %s3221_s19 = smov 0   ;;  %s3996_s0 = inlined_call_operand.vmem [shape: f32[2,16,32], index: 0, kind: input, shape index: {}]   ;;  %s3997_s1 = inlined_call_operand.vmem [shape: f32[2,16,32], index: 1, kind: input, shape index: {}]   ;;  %s3998_s2 = inlined_call_operand.vmem [shape: f32[2,16,32], index: 2, kind: input, shape index: {}]   ;;  %s3999_s3 = inlined_call_operand.vmem [shape: s32[2,128,1], index: 3, kind: input, shape index: {}]   ;;  %s4000_s4 = inlined_call_operand.vmem [shape: f32[2,128,3], index: 4, kind: input, shape index: {}]   ;;  %s4001_s5 = inlined_call_operand.vmem [shape: f32[2,16,8], index: 5, kind: input, shape index: {}]   ;;  %s4002_s6 = inlined_call_operand.vmem [shape: bf16[3,32], index: 6, kind: input, shape index: {}]   ;;  %s4003_s7 = inlined_call_operand.vmem [shape: f32[1,32], index: 7, kind: input, shape index: {}, may-alias: {7,9}]   ;;  %s4004_s8 = inlined_call_operand.vmem [shape: bf16[32,32], index: 8, kind: input, shape index: {}]   ;;  %s4005_s9 = inlined_call_operand.vmem [shape: f32[1,32], index: 9, kind: input, shape index: {}, may-alias: {7,9}]   ;;  %s4006_s10 = inlined_call_operand.vmem [shape: bf16[32,8], index: 10, kind: input, shape index: {}]   ;;  %s4007_s11 = inlined_call_operand.vmem [shape: f32[1,8], index: 11, kind: input, shape index: {}, may-alias: {11,13}]   ;;  %s4008_s12 = inlined_call_operand.vmem [shape: f32[1,8], index: 12, kind: input, shape index: {}]   ;;  %s4009_s13 = inlined_call_operand.vmem [shape: f32[1,8], index: 13, kind: input, shape index: {}, may-alias: {11,13}]   ;;  %s4010_s14 = inlined_call_operand.vmem [shape: f32[2,16,8], index: 14, kind: output, shape index: {0}]   ;;  %s4011_s15 = inlined_call_operand.vmem [shape: f32[2,16,8], index: 15, kind: output, shape index: {1}]  }
   0x1   :  { %s3223_s20 = smov 0  }
   0x2 LB: > { %s38_s21 = sadd.s32 1, %s3128_s19  ;;  %p2826_p0 = scmp.ge.s32.totalorder %s3132_s20, 1  ;;  %s3132_s20 = sphi %s3223_s20, %s26_s20   ;;  %s3128_s19 = sphi %s3221_s19, %s4013_s19   ;;  %s3124_s18 = sphi %s3219_s18, %s4012_s18  }
   0x3   : > { %p40_p1 = scmp.ge.s32.totalorder %s38_s21, 2  ;;  %p534_p2 = scmp.lt.s32.totalorder %s3132_s20, 3 }
   0x5   : > { %s4015_s21 = smov (%p40_p1, %s38_s21), 0  ;;  %p535_p3 = pnand %p2826_p0, %p534_p2 }
   0x6   : > { %v731_v0 = vld [vmem:[%s4002_s6] sm:$0x3] (!%p535_p3)  ;;  %vm764_vm0 = vcmask (!%p535_p3), 1040384   ;;  %vm765_vm1 = vcmask (!%p535_p3), 1041408   ;;  %p637_p4 = scmp.lt.s32.totalorder (!%p535_p3), %s3124_s18, 1  ;;  %v3134_v1 = vmov (!%p535_p3), 65535   ;;  %v1053_v55 = vlaneseq (!%p535_p3) }
   0x7   : > { %538 = sbr.rel (%p535_p3) target bundleno = 1840 (0x730), region = 76  ;;  %v766_v2 = vsel (!%p535_p3), %vm764_vm0, 4294967295, %v3134_v1  ;;  %v3135_v4 = vmov (!%p535_p3), 0   ;;  %vm739_vm2 = vcmask (!%p535_p3), 23552   ;;  %v3136_v40 = vmov (!%p535_p3), 0.0   ;;  %v3064_v50 = vld [vmem:[%s4004_s8] sm:$0xff] (!%p535_p3)  }
   0x8   : > { %v767_v3 = vsel (!%p535_p3), %vm765_vm1, %v766_v2, 0  ;;  %3062 = vset.pattern.permute.xlu0 (!%p535_p3), %v3135_v4  ;;  %3063 = vset.pattern.permute.xlu1 (!%p535_p3), %v3135_v4  ;;  %v3065_v51 = vld [vmem:[%s4004_s8 + $0x8] sm:$0xff] (!%p535_p3)   ;;  %v3315_v56 = vand.u32 (!%p535_p3), 127, %v1053_v55  ;;  %vm1165_vm7 = vcmask (!%p535_p3), 130048  }
   0x9   : > { %v769_v5 = vand.u32 (!%p535_p3), %v767_v3, %v731_v0  ;;  %2969 = vmatprep.subr.bf16.mxu1 (!%p535_p3), %v3064_v50 }
   0xa   : > { %2970 = vmatpush3.bf16.msra.mxu1 (!%p535_p3), %v3064_v50 }
   0xb   : > { %2951 = vmatprep.subr.bf16.mxu0 (!%p535_p3), %v769_v5  ;;  %2971 = vmatprep.subr.bf16.mxu1 (!%p535_p3), %v3065_v51 }
   0xc   : > { %2952 = vmatpush3.bf16.msra.mxu0 (!%p535_p3), %v769_v5 }
   0xe   : > { %s4017_s18 = smov (!%p637_p4, %s3124_s18), 1  ;;  %2972 = vmatpush3.bf16.msra.mxu1 %v3065_v51 }
   0xf   : > { %s2906_s24 = sshll.u32 %s4017_s18, 7  ;;  %s3274_s16 = sshll.u32 %s4017_s18, 4 }
  0x10   : > { %s3246_s27 = scalar_lea.vmem %s4000_s4, %s2906_s24  ;;  %s3257_s30 = scalar_lea.vmem %s3999_s3, %s2906_s24 }
  0x11   : > { %v707_v6 = vld [vmem:[%s3246_s27] sm:$0xff]  ;;  %v708_v7 = vld [vmem:[%s3246_s27 + $0x8] sm:$0xff]  ;;  %v709_v8 = vld [vmem:[%s3246_s27 + $0x10] sm:$0xff]  ;;  %s650_s23 = scalar_lea.vmem %s3997_s1, %s3274_s16  ;;  %s655_s29 = scalar_lea.vmem %s3998_s2, %s3274_s16 }
  0x12   : > { %v723_v9 = vpack.c.bf16 %v708_v7, %v707_v6  ;;  %v710_v10 = vld [vmem:[%s3246_s27 + $0x18] sm:$0xff]  ;;  %v711_v11 = vld [vmem:[%s3246_s27 + $0x20] sm:$0xff]  ;;  %v712_v12 = vld [vmem:[%s3246_s27 + $0x28] sm:$0xff]  ;;  %s644_s18 = scalar_lea.vmem %s3996_s0, %s3274_s16  ;;  %s3923_s22 = scalar_lea.vmem %s4011_s15, %s3274_s16 }
  0x13   : > { %v724_v13 = vpack.c.bf16 %v710_v10, %v709_v8  ;;  %v725_v14 = vpack.c.bf16 %v712_v12, %v711_v11  ;;  %v713_v15 = vld [vmem:[%s3246_s27 + $0x30] sm:$0xff]  ;;  %v714_v16 = vld [vmem:[%s3246_s27 + $0x38] sm:$0xff]  ;;  %v1037_v17 = vld [vmem:[%s3257_s30] sm:$0xff]  ;;  %s684_s28 = scalar_lea.vmem %s4001_s5, %s3274_s16 }
  0x14   : > { %2953 = vmatprep.mubr.msk.bf16.mxu0 %vm739_vm2, %v723_v9  ;;  %v1039_v18 = vld [vmem:[%s3257_s30 + $0x10] sm:$0xff]  ;;  %v715_v19 = vld [vmem:[%s3246_s27 + $0x40] sm:$0xff]  ;;  %v716_v20 = vld [vmem:[%s3246_s27 + $0x48] sm:$0xff]  ;;  %1056 = vperm.xlu0 %3062, %v1037_v17   ;;  %v726_v23 = vpack.c.bf16 %v714_v16, %v713_v15 }
  0x15   : > { %2954 = vmatmul.mubr.msk.bf16.vlgmr.msra.gmra.mrb[0].mxu0 %vm739_vm2, %v724_v13  ;;  %1062 = vperm.xlu1 %3063, %v1039_v18   ;;  %v1038_v21 = vld [vmem:[%s3257_s30 + $0x8] sm:$0xff]  ;;  %v1040_v22 = vld [vmem:[%s3257_s30 + $0x18] sm:$0xff]  ;;  %v727_v24 = vpack.c.bf16 %v716_v20, %v715_v19  ;;  %v1041_v26 = vld [vmem:[%s3257_s30 + $0x20] sm:$0xff] }
  0x16   : > { %2957 = vmatprep.mubr.msk.bf16.mxu0 %vm739_vm2, %v725_v14  ;;  %v1042_v25 = vld [vmem:[%s3257_s30 + $0x28] sm:$0xff]  ;;  %v717_v27 = vld [vmem:[%s3246_s27 + $0x50] sm:$0xff]  ;;  %v718_v28 = vld [vmem:[%s3246_s27 + $0x58] sm:$0xff] }
  0x17   : > { %v719_v29 = vld [vmem:[%s3246_s27 + $0x60] sm:$0xff]  ;;  %v720_v30 = vld [vmem:[%s3246_s27 + $0x68] sm:$0xff]  ;;  %v1044_v33 = vld [vmem:[%s3257_s30 + $0x38] sm:$0xff]  ;;  %v728_v36 = vpack.c.bf16 %v718_v28, %v717_v27 }
  0x18   : > { %1059 = vperm.xlu0 %3062, %v1038_v21   ;;  %v1159_v31 = vld [vmem:[%s650_s23] sm:$0xff]  ;;  %v1160_v32 = vld [vmem:[%s650_s23 + $0x8] sm:$0xff]  ;;  %v1043_v34 = vld [vmem:[%s3257_s30 + $0x30] sm:$0xff]  ;;  %v729_v37 = vpack.c.bf16 %v720_v30, %v719_v29  ;;  %s694_s23 = scalar_lea.vmem %s4010_s14, %s3274_s16 }
  0x19   : > { %1065 = vperm.xlu1 %3063, %v1040_v22   ;;  %v1161_v35 = vpack.c.bf16 %v1160_v32, %v1159_v31  ;;  %v1046_v38 = vld [vmem:[%s3257_s30 + $0x48] sm:$0xff]  ;;  %v1045_v39 = vld [vmem:[%s3257_s30 + $0x40] sm:$0xff]  ;;  %v721_v41 = vld [vmem:[%s3246_s27 + $0x70] sm:$0xff] }
  0x1a   : > { %v722_v42 = vld [vmem:[%s3246_s27 + $0x78] sm:$0xff]  ;;  %v1047_v44 = vld [vmem:[%s3257_s30 + $0x50] sm:$0xff]  ;;  %v1050_v46 = vld [vmem:[%s3257_s30 + $0x68] sm:$0xff] }
  0x1b   : > { %2989 = vmatprep.subr.bf16.mxu0 %v1161_v35  ;;  %v1048_v43 = vld [vmem:[%s3257_s30 + $0x58] sm:$0xff]  ;;  %v730_v45 = vpack.c.bf16 %v722_v42, %v721_v41  ;;  %v1049_v47 = vld [vmem:[%s3257_s30 + $0x60] sm:$0xff]  ;;  %v1051_v49 = vld [vmem:[%s3257_s30 + $0x70] sm:$0xff] }
  0x1c   : > { %1068 = vperm.xlu0 %3062, %v1041_v26   ;;  %2990 = vmatpush3.bf16.msra.mxu0 %v1161_v35  ;;  %v1052_v48 = vld [vmem:[%s3257_s30 + $0x78] sm:$0xff]  ;;  %v1162_v52 = vld [vmem:[%s655_s29] sm:$0xff]  ;;  %v1163_v53 = vld [vmem:[%s655_s29 + $0x8] sm:$0xff] }
  0x1d   : > { %2958 = vmatmul.mubr.msk.bf16.gmra.mrb[4].mxu0 %vm739_vm2, %v726_v23  ;;  %1071 = vperm.xlu1 %3063, %v1042_v25   ;;  %v3311_v54 = vpack.c.bf16 %v1163_v53, %v1162_v52 }
  0x1e   : > { %2961 = vmatprep.mubr.msk.bf16.mxu0 %vm739_vm2, %v727_v24  ;;  %3025 = vmatprep.subr.bf16.mxu0 %v3136_v40 }
  0x1f   : > { %3007 = vmatprep.subr.bf16.mxu1 %v3311_v54 }
  0x20   : > { %1074 = vperm.xlu0 %3062, %v1043_v34  }
  0x21   : > { %1077 = vperm.xlu1 %3063, %v1044_v33   ;;  %v2843_v33 = vld [vmem:[%s4003_s7] ss:$0 sm:$0xff] }
  0x24   : > { %1080 = vperm.xlu0 %3062, %v1045_v39  }
  0x25   : > { %2962 = vmatmul.mubr.msk.bf16.gmra.mrb[8].mxu0 %vm739_vm2, %v728_v36  ;;  %1083 = vperm.xlu1 %3063, %v1046_v38  }
  0x26   : > { %2965 = vmatprep.mubr.msk.bf16.mxu0 %vm739_vm2, %v729_v37 }
  0x28   : > { %1086 = vperm.xlu0 %3062, %v1047_v44  }
  0x29   : > { %1089 = vperm.xlu1 %3063, %v1048_v43  }
  0x2c   : > { %1092 = vperm.xlu0 %3062, %v1049_v47  }
  0x2d   : > { %2966 = vmatmul.mubr.msk.bf16.gmra.mrb[12].mxu0 %vm739_vm2, %v730_v45  ;;  %1095 = vperm.xlu1 %3063, %v1050_v46  }
  0x30   : > { %1098 = vperm.xlu0 %3062, %v1051_v49  }
  0x31   : > { %1101 = vperm.xlu1 %3063, %v1052_v48  }
  0x93   : > { %v1057_v57 = vpop.permute.xlu0 %1056 }
  0x94   : > { %v1063_v58 = vpop.permute.xlu1 %1062  ;;  %vm1103_vm3 = vcmp.eq.s32.totalorder %v3315_v56, %v1057_v57 }
  0x95   : > { %vm1105_vm4 = vcmp.eq.s32.totalorder %v3315_v56, %v1063_v58  ;;  %v2863_v59 = vsel %vm1103_vm3, 1.0, %v3136_v40 }
  0x96   : > { %v2865_v60 = vsel %vm1105_vm4, 1.0, %v3136_v40  ;;  %vm915_vm4 = vcmask 261120  }
  0x97   : > { %v1060_v61 = vpop.permute.xlu0 %1059 }
  0x98   : > { %v1066_v62 = vpop.permute.xlu1 %1065  ;;  %vm1104_vm5 = vcmp.eq.s32.totalorder %v3315_v56, %v1060_v61 }
  0x99   : > { %vm1106_vm6 = vcmp.eq.s32.totalorder %v3315_v56, %v1066_v62  ;;  %v2864_v63 = vsel %vm1104_vm5, 1.0, %v3136_v40  ;;  %vm1726_vm5 = vcmask 1041409  }
  0x9a   : > { %v2866_v0 = vsel %vm1106_vm6, 1.0, %v3136_v40  ;;  %v3325_v1 = vpack.c.bf16 %v2864_v63, %v2863_v59  ;;  %vm1728_vm6 = vcmask 1042434  }
  0x9b   : > { %v3327_v2 = vpack.c.bf16 %v2866_v0, %v2865_v60  ;;  %v1069_v4 = vpop.permute.xlu0 %1068 }
  0x9c   : > { %v1072_v3 = vpop.permute.xlu1 %1071  ;;  %2991 = vmatprep.mubr.msk.bf16.mxu0 %vm1165_vm7, %v3325_v1  ;;  %vm1107_vm9 = vcmp.eq.s32.totalorder %v3315_v56, %v1069_v4 }
  0x9d   : > { %vm1108_vm8 = vcmp.eq.s32.totalorder %v3315_v56, %v1072_v3  ;;  %v2867_v6 = vsel %vm1107_vm9, 1.0, %v3136_v40  ;;  %2992 = vmatmul.mubr.msk.bf16.vlgmr.msra.gmra.mrb[16].mxu0 %vm1165_vm7, %v3327_v2  ;;  %vm1734_vm9 = vcmask 1045509  }
  0x9e   : > { %v2868_v5 = vsel %vm1108_vm8, 1.0, %v3136_v40  ;;  %vm1732_vm8 = vcmask 1044484  }
  0x9f   : > { %v3337_v7 = vpack.c.bf16 %v2868_v5, %v2867_v6  ;;  %v1075_v9 = vpop.permute.xlu0 %1074 }
  0xa0   : > { %v1078_v8 = vpop.permute.xlu1 %1077  ;;  %vm1109_vm11 = vcmp.eq.s32.totalorder %v3315_v56, %v1075_v9 }
  0xa1   : > { %vm1110_vm10 = vcmp.eq.s32.totalorder %v3315_v56, %v1078_v8  ;;  %2995 = vmatprep.mubr.msk.bf16.mxu0 %vm1165_vm7, %v3337_v7  ;;  %v2869_v11 = vsel %vm1109_vm11, 1.0, %v3136_v40  ;;  %vm1738_vm11 = vcmask 1047559  }
  0xa2   : > { %v2870_v10 = vsel %vm1110_vm10, 1.0, %v3136_v40  ;;  %vm1736_vm10 = vcmask 1046534  }
  0xa3   : > { %v3345_v12 = vpack.c.bf16 %v2870_v10, %v2869_v11  ;;  %v1081_v14 = vpop.permute.xlu0 %1080 }
  0xa4   : > { %v1084_v13 = vpop.permute.xlu1 %1083  ;;  %vm1111_vm13 = vcmp.eq.s32.totalorder %v3315_v56, %v1081_v14 }
  0xa5   : > { %vm1112_vm12 = vcmp.eq.s32.totalorder %v3315_v56, %v1084_v13  ;;  %v2871_v16 = vsel %vm1111_vm13, 1.0, %v3136_v40  ;;  %2996 = vmatmul.mubr.msk.bf16.gmra.mrb[20].mxu0 %vm1165_vm7, %v3345_v12  ;;  %vm3138_vm13 = vmmov 0  }
  0xa6   : > { %v2872_v15 = vsel %vm1112_vm12, 1.0, %v3136_v40  ;;  %vm1749_vm12 = vcmask 64512  }
  0xa7   : > { %v3353_v17 = vpack.c.bf16 %v2872_v15, %v2871_v16  ;;  %v1087_v19 = vpop.permute.xlu0 %1086 }
  0xa8   : > { %v1090_v18 = vpop.permute.xlu1 %1089  ;;  %vm1113_vm15 = vcmp.eq.s32.totalorder %v3315_v56, %v1087_v19 }
  0xa9   : > { %vm1114_vm14 = vcmp.eq.s32.totalorder %v3315_v56, %v1090_v18  ;;  %2999 = vmatprep.mubr.msk.bf16.mxu0 %vm1165_vm7, %v3353_v17  ;;  %v2873_v21 = vsel %vm1113_vm15, 1.0, %v3136_v40 }
  0xaa   : > { %v2874_v20 = vsel %vm1114_vm14, 1.0, %v3136_v40 }
  0xab   : > { %v3361_v22 = vpack.c.bf16 %v2874_v20, %v2873_v21  ;;  %v1093_v24 = vpop.permute.xlu0 %1092 }
  0xac   : > { %v1096_v23 = vpop.permute.xlu1 %1095  ;;  %vm1115_vm1 = vcmp.eq.s32.totalorder %v3315_v56, %v1093_v24 }
  0xad   : > { %vm1116_vm0 = vcmp.eq.s32.totalorder %v3315_v56, %v1096_v23  ;;  %v2875_v26 = vsel %vm1115_vm1, 1.0, %v3136_v40  ;;  %3000 = vmatmul.mubr.msk.bf16.gmra.mrb[24].mxu0 %vm1165_vm7, %v3361_v22 }
  0xae   : > { %v2876_v25 = vsel %vm1116_vm0, 1.0, %v3136_v40 }
  0xaf   : > { %v3369_v27 = vpack.c.bf16 %v2876_v25, %v2875_v26  ;;  %v1099_v29 = vpop.permute.xlu0 %1098 }
  0xb0   : > { %v1102_v28 = vpop.permute.xlu1 %1101  ;;  %vm1117_vm3 = vcmp.eq.s32.totalorder %v3315_v56, %v1099_v29 }
  0xb1   : > { %vm1118_vm2 = vcmp.eq.s32.totalorder %v3315_v56, %v1102_v28  ;;  %3003 = vmatprep.mubr.msk.bf16.mxu0 %vm1165_vm7, %v3369_v27  ;;  %v2877_v31 = vsel %vm1117_vm3, 1.0, %v3136_v40 }
  0xb2   : > { %v2878_v30 = vsel %vm1118_vm2, 1.0, %v3136_v40 }
  0xb3   : > { %v3377_v32 = vpack.c.bf16 %v2878_v30, %v2877_v31 }
  0xb5   : > { %3004 = vmatmul.mubr.msk.bf16.gmra.mrb[28].mxu0 %vm1165_vm7, %v3377_v32 }
  0xb6   : > { %3029 = vmatprep.mubr.msk.bf16.mxu0 %vm3138_vm13, %v3136_v40 }
  0xe8   : > { %v2955_v34 = vpop.f32.mrb[0].mxu0 }
  0xe9   : > { %v814_v35 = vadd.f32 %v2955_v34, %v2843_v33  ;;  %v805_v36 = vpop.f32.mrb[1].mxu0 }
  0xea   : > { %v806_v37 = vadd.f32 %v2843_v33, %v805_v36  ;;  %v2956_v38 = vpop.f32.mrb[2].mxu0 }
  0xeb   : > { %v817_v39 = vadd.f32 %v2956_v38, %v2843_v33  ;;  %v808_v41 = vpop.f32.mrb[3].mxu0  ;;  %v870_v43 = vmax.f32 %v814_v35, 0.0 }
  0xec   : > { %v809_v42 = vadd.f32 %v2843_v33, %v808_v41  ;;  %v868_v45 = vmax.f32 %v806_v37, 0.0 }
  0xed   : > { %v871_v44 = vmax.f32 %v817_v39, 0.0 }
  0xee   : > { %v869_v46 = vmax.f32 %v809_v42, 0.0 }
  0xef   : > { %v885_v47 = vpack.c.bf16 %v871_v44, %v870_v43 }
  0xf0   : > { %v2959_v48 = vpop.f32.mrb[4].mxu0  ;;  %v884_v49 = vpack.c.bf16 %v869_v46, %v868_v45  ;;  %v3137_v46 = vmov 1966171168  }
  0xf1   : > { %v830_v50 = vadd.f32 %v2959_v48, %v2843_v33  ;;  %v821_v51 = vpop.f32.mrb[5].mxu0 }
  0xf2   : > { %v822_v52 = vadd.f32 %v2843_v33, %v821_v51  ;;  %v2960_v53 = vpop.f32.mrb[6].mxu0  ;;  %2973 = vmatprep.mubr.msk.bf16.mxu1 %vm915_vm4, %v884_v49  ;;  %v3434_v49 = vshrl.u32 %v1053_v55, 7  ;;  %v1384_v51 = vld [vmem:[%s644_s18] sm:$0xff] }
  0xf3   : > { %v833_v57 = vadd.f32 %v2960_v53, %v2843_v33  ;;  %v824_v58 = vpop.f32.mrb[7].mxu0  ;;  %2974 = vmatmul.mubr.msk.bf16.vlgmr.msra.gmra.mrb[0].mxu1 %vm915_vm4, %v885_v47  ;;  %v874_v60 = vmax.f32 %v830_v50, 0.0  ;;  %v1390_v47 = vunpack.c.l.s4 %v3137_v46 }
  0xf4   : > { %v825_v59 = vadd.f32 %v2843_v33, %v824_v58  ;;  %3008 = vmatpush3.bf16.msra.mxu1 %v3311_v54  ;;  %v872_v62 = vmax.f32 %v822_v52, 0.0  ;;  %v1388_v58 = vcombine.high %v1384_v51, %v1384_v51  ;;  %v3447_v55 = vsub.s32 0, %v3434_v49 }
  0xf5   : > { %v875_v61 = vmax.f32 %v833_v57, 0.0  ;;  %v1391_v48 = vunpack.c.0.s8 %v1390_v47 }
  0xf6   : > { %v873_v63 = vmax.f32 %v825_v59, 0.0 }
  0xf7   : > { %v887_v0 = vpack.c.bf16 %v875_v61, %v874_v60  ;;  %v3441_v50 = vsub.s32 %v1391_v48, %v3434_v49  ;;  %v3452_v61 = vld [vmem:[%s4005_s9] ss:$0 sm:$0xff] }
  0xf8   : > { %v886_v3 = vpack.c.bf16 %v873_v63, %v872_v62  ;;  %v2963_v4 = vpop.f32.mrb[8].mxu0 }
  0xf9   : > { %v846_v5 = vadd.f32 %v2963_v4, %v2843_v33  ;;  %v837_v6 = vpop.f32.mrb[9].mxu0  ;;  %v1395_v52 = vrot.slane %v1384_v51, %v3441_v50  ;;  %v1402_v62 = vrot.slane %v1388_v58, %v3441_v50 }
  0xfa   : > { %v838_v8 = vadd.f32 %v2843_v33, %v837_v6  ;;  %v2964_v9 = vpop.f32.mrb[10].mxu0  ;;  %2977 = vmatprep.mubr.msk.bf16.mxu1 %vm915_vm4, %v886_v3 }
  0xfb   : > { %v849_v10 = vadd.f32 %v2964_v9, %v2843_v33  ;;  %v840_v11 = vpop.f32.mrb[11].mxu0  ;;  %2978 = vmatmul.mubr.msk.bf16.gmra.mrb[4].mxu1 %vm915_vm4, %v887_v0  ;;  %v878_v14 = vmax.f32 %v846_v5, 0.0  ;;  %v1403_v53 = vcombine.high %v1395_v52, %v1395_v52  ;;  %v1411_v57 = vrot.slane %v1395_v52, %v3441_v50 }
  0xfc   : > { %v841_v13 = vadd.f32 %v2843_v33, %v840_v11  ;;  %v876_v15 = vmax.f32 %v838_v8, 0.0  ;;  %v1385_v11 = vld [vmem:[%s644_s18 + $0x8] sm:$0xff] }
  0xfd   : > { %v879_v54 = vmax.f32 %v849_v10, 0.0  ;;  %v1425_v59 = vrot.slane %v1403_v53, %v3441_v50  ;;  %v1433_v60 = vcombine.high %v1411_v57, %v1411_v57  ;;  %v1489_v9 = vrot.slane %v1411_v57, %v3447_v55 }
  0xfe   : > { %v877_v16 = vmax.f32 %v841_v13, 0.0  ;;  %v3464_v10 = vrot.slane %v1402_v62, %v3441_v50 }
  0xff   : > { %v889_v18 = vpack.c.bf16 %v879_v54, %v878_v14  ;;  %v1435_v63 = vcombine.high %v1425_v59, %v1425_v59  ;;  %v1497_v5 = vrot.slane %v1433_v60, %v3447_v55 }
 0x100   : > { %v888_v19 = vpack.c.bf16 %v877_v16, %v876_v15  ;;  %v2967_v20 = vpop.f32.mrb[12].mxu0 }
 0x101   : > { %v862_v21 = vadd.f32 %v2967_v20, %v2843_v33  ;;  %v853_v23 = vpop.f32.mrb[13].mxu0  ;;  %v1501_v15 = vrot.slane %v1435_v63, %v3447_v55  ;;  %v1437_v63 = vcombine.high %v1385_v11, %v1385_v11 }
 0x102   : > { %v854_v24 = vadd.f32 %v2843_v33, %v853_v23  ;;  %v2968_v25 = vpop.f32.mrb[14].mxu0  ;;  %2981 = vmatprep.mubr.msk.bf16.mxu1 %vm915_vm4, %v888_v19 }
 0x103   : > { %v882_v26 = vmax.f32 %v862_v21, 0.0  ;;  %v865_v28 = vadd.f32 %v2968_v25, %v2843_v33  ;;  %v856_v29 = vpop.f32.mrb[15].mxu0  ;;  %2982 = vmatmul.mubr.msk.bf16.gmra.mrb[8].mxu1 %vm915_vm4, %v889_v18  ;;  %v1444_v21 = vrot.slane %v1385_v11, %v3441_v50  ;;  %v1434_v25 = vcombine.high %v3464_v10, %v3464_v10 }
 0x104   : > { %v880_v30 = vmax.f32 %v854_v24, 0.0  ;;  %v857_v31 = vadd.f32 %v2843_v33, %v856_v29  ;;  %v1493_v29 = vrot.slane %v1425_v59, %v3447_v55 }
 0x105   : > { %v883_v34 = vmax.f32 %v865_v28, 0.0 }
 0x106   : > { %v881_v35 = vmax.f32 %v857_v31, 0.0 }
 0x107   : > { %v891_v36 = vpack.c.bf16 %v883_v34, %v882_v26 }
 0x108   : > { %v890_v37 = vpack.c.bf16 %v881_v35, %v880_v30 }
 0x10a   : > { %2985 = vmatprep.mubr.msk.bf16.mxu1 %vm915_vm4, %v890_v37  ;;  %v1404_v37 = vcombine.high %v1402_v62, %v1402_v62 }
 0x10b   : > { %2986 = vmatmul.mubr.msk.bf16.gmra.mrb[12].mxu1 %vm915_vm4, %v891_v36  ;;  %v1460_v36 = vrot.slane %v1444_v21, %v3441_v50 }
 0x10c   : > { %3009 = vmatprep.mubr.msk.bf16.mxu1 %vm1165_vm7, %v3325_v1 }
 0x10d   : > { %v1482_v59 = vcombine.high %v1460_v36, %v1460_v36 }
 0x113   : > { %3010 = vmatmul.mubr.msk.bf16.vlgmr.msra.gmra.mrb[16].mxu1 %vm1165_vm7, %v3327_v2 }
 0x114   : > { %3013 = vmatprep.mubr.msk.bf16.mxu1 %vm1165_vm7, %v3337_v7 }
 0x11b   : > { %3014 = vmatmul.mubr.msk.bf16.gmra.mrb[20].mxu1 %vm1165_vm7, %v3345_v12 }
 0x11c   : > { %3017 = vmatprep.mubr.msk.bf16.mxu1 %vm1165_vm7, %v3353_v17 }
 0x123   : > { %3018 = vmatmul.mubr.msk.bf16.gmra.mrb[24].mxu1 %vm1165_vm7, %v3361_v22 }
 0x124   : > { %3021 = vmatprep.mubr.msk.bf16.mxu1 %vm1165_vm7, %v3369_v27 }
 0x12b   : > { %3022 = vmatmul.mubr.msk.bf16.gmra.mrb[28].mxu1 %vm1165_vm7, %v3377_v32  ;;  %vm1730_vm7 = vcmask 1043459  }
 0x170   : > { %v2993_v1 = vpop.f32.mrb[16].mxu0 }
 0x171   : > { %v1224_v2 = vpop.f32.mrb[17].mxu0 }
 0x172   : > { %v2994_v33 = vpop.f32.mrb[18].mxu0 }
 0x173   : > { %v1227_v38 = vpop.f32.mrb[19].mxu0 }
 0x178   : > { %v3409_v7 = vpop.f32.mrb[20].mxu0 }
 0x179   : > { %v3411_v12 = vpop.f32.mrb[21].mxu0 }
 0x17a   : > { %v3413_v39 = vpop.f32.mrb[22].mxu0 }
 0x17b   : > { %v3415_v17 = vpop.f32.mrb[23].mxu0 }
 0x180   : > { %v3417_v22 = vpop.f32.mrb[24].mxu0 }
 0x181   : > { %v3419_v41 = vpop.f32.mrb[25].mxu0 }
 0x182   : > { %v3421_v27 = vpop.f32.mrb[26].mxu0 }
 0x183   : > { %v3423_v32 = vpop.f32.mrb[27].mxu0 }
 0x188   : > { %v3425_v42 = vpop.f32.mrb[28].mxu0 }
 0x189   : > { %v3427_v43 = vpop.f32.mrb[29].mxu0 }
 0x18a   : > { %v3429_v44 = vpop.f32.mrb[30].mxu0 }
 0x18b   : > { %v3431_v45 = vpop.f32.mrb[31].mxu0 }
 0x1c6   : > { %v2975_v0 = vpop.f32.mrb[0].mxu1 }
 0x1c7   : > { %v3456_v3 = vadd.f32 %v2975_v0, %v3452_v61  ;;  %v974_v4 = vpop.f32.mrb[1].mxu1 }
 0x1c8   : > { %v3460_v6 = vadd.f32 %v3452_v61, %v974_v4  ;;  %v2976_v8 = vpop.f32.mrb[2].mxu1 }
 0x1c9   : > { %v1233_v13 = vadd.f32 %v2993_v1, %v3456_v3  ;;  %v3468_v14 = vadd.f32 %v2976_v8, %v3452_v61  ;;  %v977_v54 = vpop.f32.mrb[3].mxu1 }
 0x1ca   : > { %v1225_v16 = vadd.f32 %v1224_v2, %v3460_v6  ;;  %v3473_v18 = vadd.f32 %v3452_v61, %v977_v54 }
 0x1cb   : > { %v1236_v19 = vadd.f32 %v2994_v33, %v3468_v14  ;;  %v1568_v20 = vmul.f32 %v1497_v5, %v1233_v13  ;;  %v1513_v33 = vrot.slane %v1434_v25, %v3447_v55 }
 0x1cc   : > { %v1228_v23 = vadd.f32 %v1227_v38, %v3473_v18  ;;  %v1566_v24 = vmul.f32 %v1489_v9, %v1225_v16  ;;  %v1452_v38 = vcombine.high %v1444_v21, %v1444_v21  ;;  %v1529_v9 = vrot.slane %v1482_v59, %v3447_v55 }
 0x1cd   : > { %v1588_v26 = vsel %vm915_vm4, %v1568_v20, 0.0  ;;  %v1569_v28 = vmul.f32 %v1501_v15, %v1236_v19  ;;  %v1521_v15 = vrot.slane %v1460_v36, %v3447_v55 }
 0x1ce   : > { %v2979_v30 = vpop.f32.mrb[4].mxu1  ;;  %1589 = vadd.xlane.f32.xlu1 %v1588_v26  ;;  %v1582_v31 = vsel %vm915_vm4, %v1566_v24, 0.0  ;;  %v1567_v52 = vmul.f32 %v1493_v29, %v1228_v23  ;;  %v1474_v62 = vrot.slane %v1452_v38, %v3441_v50 }
 0x1cf   : > { %v3484_v34 = vadd.f32 %v2979_v30, %v3452_v61  ;;  %v990_v35 = vpop.f32.mrb[5].mxu1  ;;  %1583 = vadd.xlane.f32.xlu0 %v1582_v31  ;;  %v1591_v51 = vsel %vm915_vm4, %v1569_v28, 0.0 }
 0x1d0   : > { %v3488_v1 = vadd.f32 %v3452_v61, %v990_v35  ;;  %v2980_v2 = vpop.f32.mrb[6].mxu1  ;;  %v1585_v0 = vsel %vm915_vm4, %v1567_v52, 0.0  ;;  %v1484_v16 = vcombine.high %v1474_v62, %v1474_v62 }
 0x1d1   : > { %v1249_v46 = vadd.f32 %v3409_v7, %v3484_v34  ;;  %v3494_v47 = vadd.f32 %v2980_v2, %v3452_v61  ;;  %v993_v48 = vpop.f32.mrb[7].mxu1  ;;  %v1432_v7 = vrot.slane %v1404_v37, %v3441_v50 }
 0x1d2   : > { %v1241_v53 = vadd.f32 %v3411_v12, %v3488_v1  ;;  %v3500_v57 = vadd.f32 %v3452_v61, %v993_v48  ;;  %1592 = vadd.xlane.f32.xlu1 %v1591_v51  ;;  %v1505_v12 = vrot.slane %v3464_v10, %v3447_v55  ;;  %v1451_v10 = vrot.slane %v1437_v63, %v3441_v50 }
 0x1d3   : > { %v1252_v58 = vadd.f32 %v3413_v39, %v3494_v47  ;;  %v1572_v4 = vmul.f32 %v1513_v33, %v1249_v46  ;;  %v1509_v13 = vrot.slane %v1432_v7, %v3447_v55  ;;  %v1533_v2 = vrot.slane %v1484_v16, %v3447_v55 }
 0x1d4   : > { %v1244_v60 = vadd.f32 %v3415_v17, %v3500_v57  ;;  %v1436_v17 = vcombine.high %v1432_v7, %v1432_v7  ;;  %v1570_v24 = vmul.f32 %v1505_v12, %v1241_v53  ;;  %v1467_v35 = vrot.slane %v1451_v10, %v3441_v50 }
 0x1d5   : > { %v1600_v23 = vsel %vm915_vm4, %v1572_v4, 0.0 }
 0x1d6   : > { %v2983_v5 = vpop.f32.mrb[8].mxu1  ;;  %1586 = vadd.xlane.f32.xlu1 %v1585_v0  ;;  %v1571_v30 = vmul.f32 %v1509_v13, %v1244_v60  ;;  %v1517_v31 = vrot.slane %v1436_v17, %v3447_v55  ;;  %v1483_v53 = vcombine.high %v1467_v35, %v1467_v35 }
 0x1d7   : > { %v3512_v8 = vadd.f32 %v2983_v5, %v3452_v61  ;;  %v1006_v39 = vpop.f32.mrb[9].mxu1 }
 0x1d8   : > { %v3517_v54 = vadd.f32 %v3452_v61, %v1006_v39  ;;  %v2984_v11 = vpop.f32.mrb[10].mxu1  ;;  %v1597_v51 = vsel %vm915_vm4, %v1571_v30, 0.0  ;;  %v1573_v52 = vmul.f32 %v1517_v31, %v1252_v58  ;;  %v1545_v13 = vrot.slane %v1483_v53, %v3447_v55 }
 0x1d9   : > { %v1265_v19 = vadd.f32 %v3417_v22, %v3512_v8  ;;  %v3524_v20 = vadd.f32 %v2984_v11, %v3452_v61  ;;  %v1009_v21 = vpop.f32.mrb[11].mxu1 }
 0x1da   : > { %v1257_v25 = vadd.f32 %v3419_v41, %v3517_v54  ;;  %v3530_v26 = vadd.f32 %v3452_v61, %v1009_v21  ;;  %1601 = vadd.xlane.f32.xlu1 %v1600_v23  ;;  %v1594_v41 = vsel %vm915_vm4, %v1570_v24, 0.0  ;;  %v1603_v39 = vsel %vm915_vm4, %v1573_v52, 0.0 }
 0x1db   : > { %v1268_v28 = vadd.f32 %v3421_v27, %v3524_v20  ;;  %v1576_v29 = vmul.f32 %v1529_v9, %v1265_v19  ;;  %v1537_v21 = vrot.slane %v1467_v35, %v3447_v55 }
 0x1dc   : > { %v1260_v22 = vadd.f32 %v3423_v32, %v3530_v26  ;;  %v1574_v37 = vmul.f32 %v1521_v15, %v1257_v25  ;;  %v1525_v32 = vrot.slane %v1474_v62, %v3447_v55 }
 0x1dd   : > { %v1612_v36 = vsel %vm915_vm4, %v1576_v29, 0.0  ;;  %v1577_v0 = vmul.f32 %v1533_v2, %v1268_v28 }
 0x1de   : > { %v2987_v33 = vpop.f32.mrb[12].mxu1  ;;  %1613 = vadd.xlane.f32.xlu0 %v1612_v36  ;;  %1595 = vadd.xlane.f32.xlu1 %v1594_v41  ;;  %v1606_v63 = vsel %vm915_vm4, %v1574_v37, 0.0  ;;  %v1575_v9 = vmul.f32 %v1525_v32, %v1260_v22 }
 0x1df   : > { %v3542_v27 = vadd.f32 %v2987_v33, %v3452_v61  ;;  %v1022_v38 = vpop.f32.mrb[13].mxu1  ;;  %v1615_v5 = vsel %vm915_vm4, %v1577_v0, 0.0 }
 0x1e0   : > { %v3546_v46 = vadd.f32 %v3452_v61, %v1022_v38  ;;  %v2988_v48 = vpop.f32.mrb[14].mxu1 }
 0x1e1   : > { %v1281_v59 = vadd.f32 %v3425_v42, %v3542_v27  ;;  %v3552_v7 = vadd.f32 %v2988_v48, %v3452_v61  ;;  %v1025_v60 = vpop.f32.mrb[15].mxu1  ;;  %v1453_v42 = vcombine.high %v1451_v10, %v1451_v10  ;;  %v1609_v10 = vsel %vm915_vm4, %v1575_v9, 0.0 }
 0x1e2   : > { %v1273_v62 = vadd.f32 %v3427_v43, %v3546_v46  ;;  %v1026_v4 = vadd.f32 %v3452_v61, %v1025_v60  ;;  %1607 = vadd.xlane.f32.xlu0 %v1606_v63  ;;  %1598 = vadd.xlane.f32.xlu1 %v1597_v51 }
 0x1e3   : > { %v1284_v58 = vadd.f32 %v3429_v44, %v3552_v7  ;;  %v1580_v19 = vmul.f32 %v1545_v13, %v1281_v59 }
 0x1e4   : > { %v1276_v12 = vadd.f32 %v3431_v45, %v1026_v4  ;;  %v1481_v45 = vrot.slane %v1453_v42, %v3441_v50 }
 0x1e6   : > { %v3011_v17 = vpop.f32.mrb[16].mxu1  ;;  %1616 = vadd.xlane.f32.xlu0 %v1615_v5  ;;  %1604 = vadd.xlane.f32.xlu1 %v1603_v39  ;;  %v1541_v24 = vrot.slane %v1481_v45, %v3447_v55  ;;  %v1485_v25 = vcombine.high %v1481_v45, %v1481_v45 }
 0x1e7   : > { %v3565_v43 = vadd.f32 %v3011_v17, %v3456_v3  ;;  %v1321_v61 = vpop.f32.mrb[17].mxu1  ;;  %v1624_v3 = vsel %vm915_vm4, %v1580_v19, 0.0 }
 0x1e8   : > { %v3568_v11 = vadd.f32 %v1321_v61, %v3460_v6  ;;  %v3012_v44 = vpop.f32.mrb[18].mxu1  ;;  %v1578_v6 = vmul.f32 %v1537_v21, %v1273_v62  ;;  %v1579_v35 = vmul.f32 %v1541_v24, %v1276_v12  ;;  %v1549_v36 = vrot.slane %v1485_v25, %v3447_v55 }
 0x1e9   : > { %v3572_v15 = vadd.f32 %v3012_v44, %v3468_v14  ;;  %v1324_v16 = vpop.f32.mrb[19].mxu1 }
 0x1ea   : > { %v3577_v23 = vadd.f32 %v1324_v16, %v3473_v18  ;;  %1610 = vadd.xlane.f32.xlu0 %v1609_v10  ;;  %v1618_v31 = vsel %vm915_vm4, %v1578_v6, 0.0  ;;  %v1581_v37 = vmul.f32 %v1549_v36, %v1284_v58 }
 0x1ee   : > { %v3015_v50 = vpop.f32.mrb[20].mxu1  ;;  %1625 = vadd.xlane.f32.xlu0 %v1624_v3 }
 0x1ef   : > { %v3582_v14 = vadd.f32 %v3015_v50, %v3484_v34  ;;  %v1337_v28 = vpop.f32.mrb[21].mxu1  ;;  %v1621_v34 = vsel %vm915_vm4, %v1579_v35, 0.0 }
 0x1f0   : > { %v3585_v29 = vadd.f32 %v1337_v28, %v3488_v1  ;;  %v3016_v22 = vpop.f32.mrb[22].mxu1 }
 0x1f1   : > { %v3588_v18 = vadd.f32 %v3016_v22, %v3494_v47  ;;  %v1340_v30 = vpop.f32.mrb[23].mxu1 }
 0x1f2   : > { %v3593_v41 = vadd.f32 %v1340_v30, %v3500_v57  ;;  %1619 = vadd.xlane.f32.xlu0 %v1618_v31  ;;  %v1627_v57 = vsel %vm915_vm4, %v1581_v37, 0.0 }
 0x1f6   : > { %v3019_v2 = vpop.f32.mrb[24].mxu1  ;;  %1622 = vadd.xlane.f32.xlu0 %v1621_v34 }
 0x1f7   : > { %v3597_v1 = vadd.f32 %v3019_v2, %v3512_v8  ;;  %v1353_v47 = vpop.f32.mrb[25].mxu1 }
 0x1f8   : > { %v3600_v33 = vadd.f32 %v1353_v47, %v3517_v54  ;;  %v3020_v38 = vpop.f32.mrb[26].mxu1 }
 0x1f9   : > { %v3603_v32 = vadd.f32 %v3020_v38, %v3524_v20  ;;  %v1356_v48 = vpop.f32.mrb[27].mxu1 }
 0x1fa   : > { %v3607_v51 = vadd.f32 %v1356_v48, %v3530_v26  ;;  %1628 = vadd.xlane.f32.xlu0 %v1627_v57 }
 0x1fe   : > { %v3023_v52 = vpop.f32.mrb[28].mxu1 }
 0x1ff   : > { %v3610_v53 = vadd.f32 %v3023_v52, %v3542_v27  ;;  %v1369_v8 = vpop.f32.mrb[29].mxu1  ;;  %v3624_v27 = vsub.s32 %v3315_v56, %v3434_v49 }
 0x200   : > { %v3613_v59 = vadd.f32 %v1369_v8, %v3546_v46  ;;  %v3024_v54 = vpop.f32.mrb[30].mxu1 }
 0x201   : > { %v3616_v60 = vadd.f32 %v3024_v54, %v3552_v7  ;;  %v1372_v20 = vpop.f32.mrb[31].mxu1 }
 0x202   : > { %v3618_v63 = vadd.f32 %v1372_v20, %v1026_v4 }
 0x25b   : > { %v1590_v0 = vpop.xlane.xlu1 %1589 }
 0x25c   : > { %v1584_v26 = vpop.xlane.xlu0 %1583  ;;  %v3630_v5 = vmul.f32 0.17677669, %v1590_v0 }
 0x25d   : > { %v3626_v42 = vmul.f32 0.17677669, %v1584_v26 }
 0x25e   : > { %v1673_v61 = vrot.slane %v3630_v5, %v3624_v27 }
 0x25f   : > { %v1593_v62 = vpop.xlane.xlu1 %1592  ;;  %v1665_v4 = vrot.slane %v3626_v42, %v3624_v27 }
 0x260   : > { %v3634_v13 = vmul.f32 0.17677669, %v1593_v62 }
 0x262   : > { %v1677_v19 = vrot.slane %v3634_v13, %v3624_v27 }
 0x263   : > { %v1587_v58 = vpop.xlane.xlu1 %1586 }
 0x264   : > { %v3620_v12 = vmul.f32 0.17677669, %v1587_v58 }
 0x266   : > { %v1669_v7 = vrot.slane %v3620_v12, %v3624_v27 }
 0x267   : > { %v1602_v46 = vpop.xlane.xlu1 %1601 }
 0x268   : > { %v1727_v56 = vsel %vm1726_vm5, %v1669_v7, %v1665_v4  ;;  %v3648_v3 = vmul.f32 0.17677669, %v1602_v46 }
 0x269   : > { %v1729_v44 = vsel %vm1728_vm6, %v1673_v61, %v1727_v56 }
 0x26a   : > { %v1731_v6 = vsel %vm1730_vm7, %v1677_v19, %v1729_v44  ;;  %v1689_v31 = vrot.slane %v3648_v3, %v3624_v27 }
 0x26b   : > { %v1614_v39 = vpop.xlane.xlu0 %1613  ;;  %v1596_v9 = vpop.xlane.xlu1 %1595 }
 0x26c   : > { %v3637_v17 = vmul.f32 0.17677669, %v1596_v9  ;;  %v3670_v52 = vmul.f32 0.17677669, %v1614_v39 }
 0x26e   : > { %v1681_v45 = vrot.slane %v3637_v17, %v3624_v27  ;;  %v1705_v26 = vrot.slane %v3670_v52, %v3624_v27 }
 0x26f   : > { %v1608_v16 = vpop.xlane.xlu0 %1607  ;;  %v1599_v10 = vpop.xlane.xlu1 %1598 }
 0x270   : > { %v3646_v21 = vmul.f32 0.17677669, %v1599_v10  ;;  %v1733_v25 = vsel %vm1732_vm8, %v1681_v45, %v1731_v6  ;;  %v3666_v38 = vmul.f32 0.17677669, %v1608_v16 }
 0x272   : > { %v1685_v24 = vrot.slane %v3646_v21, %v3624_v27  ;;  %v1697_v8 = vrot.slane %v3666_v38, %v3624_v27 }
 0x273   : > { %v1617_v50 = vpop.xlane.xlu0 %1616  ;;  %v1605_v28 = vpop.xlane.xlu1 %1604 }
 0x274   : > { %v3654_v22 = vmul.f32 0.17677669, %v1605_v28  ;;  %v1735_v30 = vsel %vm1734_vm9, %v1685_v24, %v1733_v25  ;;  %v3674_v20 = vmul.f32 0.17677669, %v1617_v50  ;;  %v3705_v28 = vsub.s32 1, %v3434_v49 }
 0x275   : > { %v1737_v34 = vsel %vm1736_vm10, %v1689_v31, %v1735_v30  ;;  %v3708_v30 = vsub.s32 2, %v3434_v49  ;;  %v3711_v31 = vsub.s32 3, %v3434_v49 }
 0x276   : > { %v1693_v35 = vrot.slane %v3654_v22, %v3624_v27  ;;  %v1709_v4 = vrot.slane %v3674_v20, %v3624_v27 }
 0x277   : > { %v1611_v36 = vpop.xlane.xlu0 %1610 }
 0x278   : > { %v3662_v37 = vmul.f32 0.17677669, %v1611_v36  ;;  %v1739_v2 = vsel %vm1738_vm11, %v1693_v35, %v1737_v34 }
 0x279   : > { %v1750_v47 = vsel %vm1749_vm12, %v1739_v2, -inf }
 0x27a   : > { %1751 = vmax.xlane.f32.xlu1 %v1750_v47  ;;  %v1701_v57 = vrot.slane %v3662_v37, %v3624_v27 }
 0x27b   : > { %v1626_v48 = vpop.xlane.xlu0 %1625 }
 0x27c   : > { %v1740_v0 = vsel %vm1726_vm5, %v1701_v57, %v1697_v8  ;;  %v3688_v9 = vmul.f32 0.17677669, %v1626_v48  ;;  %v3719_v57 = vsub.s32 4, %v3434_v49 }
 0x27d   : > { %v1741_v58 = vsel %vm1728_vm6, %v1705_v26, %v1740_v0 }
 0x27e   : > { %v1742_v56 = vsel %vm1730_vm7, %v1709_v4, %v1741_v58  ;;  %v1721_v19 = vrot.slane %v3688_v9, %v3624_v27  ;;  %v3724_v58 = vsub.s32 5, %v3434_v49 }
 0x27f   : > { %v1620_v54 = vpop.xlane.xlu0 %1619 }
 0x280   : > { %v3677_v62 = vmul.f32 0.17677669, %v1620_v54 }
 0x282   : > { %v1713_v46 = vrot.slane %v3677_v62, %v3624_v27 }
 0x283   : > { %v1623_v7 = vpop.xlane.xlu0 %1622 }
 0x284   : > { %v3686_v39 = vmul.f32 0.17677669, %v1623_v7  ;;  %v1743_v44 = vsel %vm1732_vm8, %v1713_v46, %v1742_v56 }
 0x286   : > { %v1717_v61 = vrot.slane %v3686_v39, %v3624_v27 }
 0x287   : > { %v1629_v45 = vpop.xlane.xlu0 %1628 }
 0x288   : > { %v3694_v16 = vmul.f32 0.17677669, %v1629_v45  ;;  %v1744_v10 = vsel %vm1734_vm9, %v1717_v61, %v1743_v44  ;;  %v3734_v61 = vsub.s32 7, %v3434_v49 }
 0x289   : > { %v1745_v24 = vsel %vm1736_vm10, %v1721_v19, %v1744_v10 }
 0x28a   : > { %v1725_v6 = vrot.slane %v3694_v16, %v3624_v27 }
 0x28c   : > { %v1746_v25 = vsel %vm1738_vm11, %v1725_v6, %v1745_v24 }
 0x28d   : > { %v1753_v50 = vsel %vm1749_vm12, %v1746_v25, -inf }
 0x28e   : > { %1754 = vmax.xlane.f32.xlu0 %v1753_v50 }
 0x307   : > { %v1752_v35 = vpop.xlane.xlu1 %1751 }
 0x308   : > { %v1761_v36 = vrot.slane %v1752_v35, %v3447_v55  ;;  %v1765_v34 = vrot.slane %v1752_v35, %v3705_v28  ;;  %v1769_v2 = vrot.slane %v1752_v35, %v3708_v30  ;;  %v1773_v8 = vrot.slane %v1752_v35, %v3711_v31 }
 0x309   : > { %v1777_v46 = vrot.slane %v1752_v35, %v3719_v57  ;;  %v1781_v4 = vrot.slane %v1752_v35, %v3724_v58 }
 0x30a   : > { %v1838_v47 = vsub.f32 %v3626_v42, %v1761_v36  ;;  %v1839_v48 = vsub.f32 %v3620_v12, %v1765_v34  ;;  %v1840_v54 = vsub.f32 %v3630_v5, %v1769_v2  ;;  %v1841_v7 = vsub.f32 %v3634_v13, %v1773_v8 }
 0x30b   : > { %v3729_v12 = vsub.s32 6, %v3434_v49  ;;  %v1842_v56 = vsub.f32 %v3637_v17, %v1777_v46  ;;  %v1843_v45 = vsub.f32 %v3646_v21, %v1781_v4  ;;  %v1789_v17 = vrot.slane %v1752_v35, %v3734_v61 }
 0x30c   : > { %v1854_v0 = vmul.f32 1.442695, %v1838_v47  ;;  %v1856_v26 = vmul.f32 1.442695, %v1839_v48  ;;  %v1858_v42 = vmul.f32 1.442695, %v1840_v54 }
 0x30d   : > { %v1860_v5 = vmul.f32 1.442695, %v1841_v7  ;;  %v1785_v44 = vrot.slane %v1752_v35, %v3729_v12  ;;  %v1862_v13 = vmul.f32 1.442695, %v1842_v56  ;;  %v1864_v49 = vmul.f32 1.442695, %v1843_v45 }
 0x30e   : > { %3070 = vpow2.f32 %v1854_v0  ;;  %v1845_v35 = vsub.f32 %v3654_v22, %v1789_v17 }
 0x30f   : > { %3072 = vpow2.f32 %v1856_v26  ;;  %v1844_v6 = vsub.f32 %v3648_v3, %v1785_v44 }
 0x310   : > { %3074 = vpow2.f32 %v1858_v42 }
 0x311   : > { %3076 = vpow2.f32 %v1860_v5  ;;  %v1866_v3 = vmul.f32 1.442695, %v1844_v6 }
 0x312   : > { %3078 = vpow2.f32 %v1862_v13 }
 0x313   : > { %3080 = vpow2.f32 %v1864_v49 }
 0x318   : > { %v3738_v10 = vpop.eup %3070 }
 0x319   : > { %v3740_v19 = vpop.eup %3072  ;;  %1903 = vperm.xlu1 %3063, %v3738_v10  }
 0x31a   : > { %1906 = vperm.xlu0 %3062, %v3740_v19   ;;  %v3748_v50 = vpop.eup %3074 }
 0x31b   : > { %v1755_v24 = vpop.xlane.xlu0 %1754  ;;  %v3755_v48 = vpop.eup %3076 }
 0x31c   : > { %v1793_v25 = vrot.slane %v1755_v24, %v3447_v55  ;;  %v1797_v21 = vrot.slane %v1755_v24, %v3705_v28  ;;  %v1801_v36 = vrot.slane %v1755_v24, %v3708_v30  ;;  %v1805_v8 = vrot.slane %v1755_v24, %v3711_v31 }
 0x31d   : > { %v1809_v26 = vrot.slane %v1755_v24, %v3719_v57  ;;  %v1821_v17 = vrot.slane %v1755_v24, %v3734_v61 }
 0x31e   : > { %v1846_v34 = vsub.f32 %v3666_v38, %v1793_v25  ;;  %v1847_v2 = vsub.f32 %v3662_v37, %v1797_v21  ;;  %1909 = vperm.xlu0 %3062, %v3748_v50   ;;  %v1848_v54 = vsub.f32 %v3670_v52, %v1801_v36  ;;  %v1868_v38 = vmul.f32 1.442695, %v1845_v35  ;;  %v3760_v37 = vpop.eup %3078 }
 0x31f   : > { %v1849_v22 = vsub.f32 %v3674_v20, %v1805_v8  ;;  %v3765_v7 = vpop.eup %3080  ;;  %v1813_v52 = vrot.slane %v1755_v24, %v3724_v58  ;;  %v1850_v42 = vsub.f32 %v3677_v62, %v1809_v26  ;;  %v1817_v20 = vrot.slane %v1755_v24, %v3729_v12 }
 0x320   : > { %v1870_v47 = vmul.f32 1.442695, %v1846_v34  ;;  %v1872_v0 = vmul.f32 1.442695, %v1847_v2  ;;  %v1874_v46 = vmul.f32 1.442695, %v1848_v54 }
 0x321   : > { %v1876_v4 = vmul.f32 1.442695, %v1849_v22  ;;  %v1851_v44 = vsub.f32 %v3686_v39, %v1813_v52  ;;  %v1878_v45 = vmul.f32 1.442695, %v1850_v42  ;;  %v1852_v6 = vsub.f32 %v3688_v9, %v1817_v20 }
 0x322   : > { %3082 = vpow2.f32 %v1870_v47  ;;  %1912 = vperm.xlu0 %3062, %v3755_v48   ;;  %v1853_v39 = vsub.f32 %v3694_v16, %v1821_v17 }
 0x323   : > { %3084 = vpow2.f32 %v1866_v3  ;;  %v1880_v49 = vmul.f32 1.442695, %v1851_v44  ;;  %v1882_v21 = vmul.f32 1.442695, %v1852_v6 }
 0x324   : > { %3086 = vpow2.f32 %v1872_v0  ;;  %v1884_v24 = vmul.f32 1.442695, %v1853_v39 }
 0x325   : > { %3088 = vpow2.f32 %v1868_v38 }
 0x326   : > { %1915 = vperm.xlu0 %3062, %v3760_v37   ;;  %3090 = vpow2.f32 %v1874_v46 }
 0x327   : > { %3092 = vpow2.f32 %v1876_v4 }
 0x328   : > { %3094 = vpow2.f32 %v1878_v45 }
 0x329   : > { %3096 = vpow2.f32 %v1880_v49 }
 0x32a   : > { %1918 = vperm.xlu0 %3062, %v3765_v7   ;;  %3098 = vpow2.f32 %v1882_v21 }
 0x32b   : > { %3100 = vpow2.f32 %v1884_v24 }
 0x32c   : > { %v3770_v56 = vpop.eup %3082 }
 0x32d   : > { %v3772_v5 = vpop.eup %3084  ;;  %1927 = vperm.xlu1 %3063, %v3770_v56  }
 0x32e   : > { %1921 = vperm.xlu0 %3062, %v3772_v5   ;;  %v3778_v13 = vpop.eup %3086 }
 0x32f   : > { %v3780_v62 = vpop.eup %3088 }
 0x330   : > { %v3786_v25 = vpop.eup %3090 }
 0x331   : > { %1930 = vperm.xlu1 %3063, %v3778_v13   ;;  %v3790_v36 = vpop.eup %3092 }
 0x332   : > { %1924 = vperm.xlu0 %3062, %v3780_v62   ;;  %v3793_v34 = vpop.eup %3094 }
 0x333   : > { %v3796_v9 = vpop.eup %3096 }
 0x334   : > { %v3799_v2 = vpop.eup %3098 }
 0x335   : > { %1933 = vperm.xlu1 %3063, %v3786_v25   ;;  %v3802_v16 = vpop.eup %3100 }
 0x339   : > { %1936 = vperm.xlu1 %3063, %v3790_v36  }
 0x33d   : > { %1939 = vperm.xlu1 %3063, %v3793_v34  }
 0x341   : > { %1942 = vperm.xlu1 %3063, %v3796_v9  }
 0x345   : > { %1945 = vperm.xlu1 %3063, %v3799_v2  }
 0x349   : > { %1948 = vperm.xlu1 %3063, %v3802_v16  }
 0x398   : > { %v1904_v54 = vpop.permute.xlu1 %1903 }
 0x399   : > { %v1907_v35 = vpop.permute.xlu0 %1906  ;;  %v1953_v26 = vrot.slane %v1904_v54, %v3624_v27 }
 0x39a   : > { %v1957_v38 = vrot.slane %v1907_v35, %v3624_v27 }
 0x39c   : > { %v2014_v20 = vsel %vm1726_vm5, %v1957_v38, %v1953_v26 }
 0x39d   : > { %v1910_v3 = vpop.permute.xlu0 %1909 }
 0x39e   : > { %v1961_v22 = vrot.slane %v1910_v3, %v3624_v27 }
 0x3a0   : > { %v2015_v45 = vsel %vm1728_vm6, %v1961_v22, %v2014_v20 }
 0x3a1   : > { %v1913_v47 = vpop.permute.xlu0 %1912 }
 0x3a2   : > { %v1965_v46 = vrot.slane %v1913_v47, %v3624_v27 }
 0x3a4   : > { %v2016_v6 = vsel %vm1730_vm7, %v1965_v46, %v2015_v45 }
 0x3a5   : > { %v1916_v8 = vpop.permute.xlu0 %1915 }
 0x3a6   : > { %v1969_v42 = vrot.slane %v1916_v8, %v3624_v27 }
 0x3a8   : > { %v2017_v39 = vsel %vm1732_vm8, %v1969_v42, %v2016_v6 }
 0x3a9   : > { %v1919_v0 = vpop.permute.xlu0 %1918 }
 0x3aa   : > { %v1973_v44 = vrot.slane %v1919_v0, %v3624_v27 }
 0x3ac   : > { %v1928_v52 = vpop.permute.xlu1 %1927  ;;  %v2018_v24 = vsel %vm1734_vm9, %v1973_v44, %v2017_v39 }
 0x3ad   : > { %v1922_v4 = vpop.permute.xlu0 %1921  ;;  %v1985_v42 = vrot.slane %v1928_v52, %v3624_v27 }
 0x3ae   : > { %v1977_v17 = vrot.slane %v1922_v4, %v3624_v27 }
 0x3b0   : > { %v1931_v49 = vpop.permute.xlu1 %1930  ;;  %v2019_v3 = vsel %vm1736_vm10, %v1977_v17, %v2018_v24 }
 0x3b1   : > { %v1925_v21 = vpop.permute.xlu0 %1924  ;;  %v1989_v22 = vrot.slane %v1931_v49, %v3624_v27 }
 0x3b2   : > { %v1981_v35 = vrot.slane %v1925_v21, %v3624_v27 }
 0x3b3   : > { %v2021_v45 = vsel %vm1726_vm5, %v1989_v22, %v1985_v42 }
 0x3b4   : > { %v1934_v47 = vpop.permute.xlu1 %1933  ;;  %v2020_v8 = vsel %vm1738_vm11, %v1981_v35, %v2019_v3 }
 0x3b5   : > { %v2030_v54 = vsel %vm1749_vm12, %v2020_v8, 0.0  ;;  %v1993_v46 = vrot.slane %v1934_v47, %v3624_v27 }
 0x3b6   : > { %2031 = vadd.xlane.f32.xlu0 %v2030_v54 }
 0x3b7   : > { %v2022_v6 = vsel %vm1728_vm6, %v1993_v46, %v2021_v45 }
 0x3b8   : > { %v1937_v0 = vpop.permute.xlu1 %1936 }
 0x3b9   : > { %v1997_v4 = vrot.slane %v1937_v0, %v3624_v27 }
 0x3bb   : > { %v2023_v21 = vsel %vm1730_vm7, %v1997_v4, %v2022_v6 }
 0x3bc   : > { %v1940_v38 = vpop.permute.xlu1 %1939 }
 0x3bd   : > { %v2001_v20 = vrot.slane %v1940_v38, %v3624_v27 }
 0x3bf   : > { %v2024_v49 = vsel %vm1732_vm8, %v2001_v20, %v2023_v21 }
 0x3c0   : > { %v1943_v26 = vpop.permute.xlu1 %1942 }
 0x3c1   : > { %v2005_v17 = vrot.slane %v1943_v26, %v3624_v27 }
 0x3c3   : > { %v2025_v52 = vsel %vm1734_vm9, %v2005_v17, %v2024_v49 }
 0x3c4   : > { %v1946_v44 = vpop.permute.xlu1 %1945 }
 0x3c5   : > { %v2009_v39 = vrot.slane %v1946_v44, %v3624_v27 }
 0x3c7   : > { %v2026_v3 = vsel %vm1736_vm10, %v2009_v39, %v2025_v52 }
 0x3c8   : > { %v1949_v24 = vpop.permute.xlu1 %1948 }
 0x3c9   : > { %v2013_v35 = vrot.slane %v1949_v24, %v3624_v27 }
 0x3cb   : > { %v2027_v47 = vsel %vm1738_vm11, %v2013_v35, %v2026_v3 }
 0x3cc   : > { %v2033_v8 = vsel %vm1749_vm12, %v2027_v47, 0.0 }
 0x3cd   : > { %2034 = vadd.xlane.f32.xlu1 %v2033_v8 }
 0x443   : > { %v2032_v54 = vpop.xlane.xlu0 %2031 }
 0x444   : > { %3102 = vrcp.f32 %v2032_v54 }
 0x44e   : > { %v3103_v0 = vpop.eup %3102 }
 0x44f   : > { %v2043_v38 = vrot.slane %v3103_v0, %v3447_v55  ;;  %v2047_v26 = vrot.slane %v3103_v0, %v3705_v28  ;;  %v2051_v42 = vrot.slane %v3103_v0, %v3708_v30  ;;  %v2055_v20 = vrot.slane %v3103_v0, %v3711_v31 }
 0x450   : > { %v2059_v45 = vrot.slane %v3103_v0, %v3719_v57  ;;  %v2067_v52 = vrot.slane %v3103_v0, %v3729_v12 }
 0x451   : > { %v2120_v22 = vmul.f32 %v3738_v10, %v2043_v38  ;;  %v2121_v46 = vmul.f32 %v3740_v19, %v2047_v26  ;;  %v2122_v4 = vmul.f32 %v3748_v50, %v2051_v42  ;;  %v2123_v44 = vmul.f32 %v3755_v48, %v2055_v20 }
 0x452   : > { %v2124_v10 = vmul.f32 %v3760_v37, %v2059_v45  ;;  %v2063_v19 = vrot.slane %v3103_v0, %v3724_v58 }
 0x453   : > { %2153 = vperm.xlu0 %3062, %v2120_v22   ;;  %2156 = vperm.xlu1 %3063, %v2121_v46  }
 0x454   : > { %v2125_v6 = vmul.f32 %v3765_v7, %v2063_v19  ;;  %v2126_v7 = vmul.f32 %v3772_v5, %v2067_v52 }
 0x457   : > { %2159 = vperm.xlu0 %3062, %v2122_v4  }
 0x45a   : > { %v2035_v17 = vpop.xlane.xlu1 %2034 }
 0x45b   : > { %2162 = vperm.xlu0 %3062, %v2123_v44   ;;  %3104 = vrcp.f32 %v2035_v17 }
 0x45f   : > { %2165 = vperm.xlu0 %3062, %v2124_v10  }
 0x463   : > { %2168 = vperm.xlu0 %3062, %v2125_v6  }
 0x465   : > { %v3105_v39 = vpop.eup %3104 }
 0x466   : > { %v2079_v50 = vrot.slane %v3105_v39, %v3705_v28  ;;  %v2075_v21 = vrot.slane %v3105_v39, %v3447_v55  ;;  %v2083_v24 = vrot.slane %v3105_v39, %v3708_v30  ;;  %v2087_v35 = vrot.slane %v3105_v39, %v3711_v31 }
 0x467   : > { %v2071_v28 = vrot.slane %v3103_v0, %v3734_v61  ;;  %v2091_v30 = vrot.slane %v3105_v39, %v3719_v57  ;;  %v2099_v31 = vrot.slane %v3105_v39, %v3729_v12  ;;  %v3068_v57 = vld [vmem:[%s4006_s10] sm:$0xff]  }
 0x468   : > { %v2129_v48 = vmul.f32 %v3778_v13, %v2079_v50  ;;  %v2128_v49 = vmul.f32 %v3770_v56, %v2075_v21  ;;  %v2130_v37 = vmul.f32 %v3786_v25, %v2083_v24  ;;  %v2131_v55 = vmul.f32 %v3790_v36, %v2087_v35  ;;  %3026 = vmatpush3.bf16.msra.mxu0 %v3068_v57 }
 0x469   : > { %v2127_v56 = vmul.f32 %v3780_v62, %v2071_v28  ;;  %v2132_v13 = vmul.f32 %v3793_v34, %v2091_v30  ;;  %v2095_v25 = vrot.slane %v3105_v39, %v3724_v58  ;;  %v2134_v3 = vmul.f32 %v3799_v2, %v2099_v31  ;;  %3027 = vmatprep.subr.bf16.mxu0 %v3136_v40  ;;  %v3069_v58 = vld [vmem:[%s4006_s10 + $0x8] sm:$0xff]  }
 0x46a   : > { %2180 = vperm.xlu1 %3063, %v2129_v48   ;;  %2177 = vperm.xlu0 %3062, %v2128_v49   ;;  %v2103_v36 = vrot.slane %v3105_v39, %v3734_v61 }
 0x46b   : > { %v2133_v5 = vmul.f32 %v3796_v9, %v2095_v25 }
 0x46c   : > { %v2135_v62 = vmul.f32 %v3802_v16, %v2103_v36  ;;  %3028 = vmatpush3.bf16.msra.mxu0 %v3069_v58 }
 0x46e   : > { %2183 = vperm.xlu1 %3063, %v2130_v37   ;;  %2171 = vperm.xlu0 %3062, %v2126_v7  }
 0x472   : > { %2186 = vperm.xlu1 %3063, %v2131_v55   ;;  %2174 = vperm.xlu0 %3062, %v2127_v56  }
 0x476   : > { %2189 = vperm.xlu1 %3063, %v2132_v13  }
 0x47a   : > { %2192 = vperm.xlu1 %3063, %v2133_v5  }
 0x47e   : > { %2195 = vperm.xlu1 %3063, %v2134_v3  }
 0x482   : > { %2198 = vperm.xlu1 %3063, %v2135_v62  }
 0x4d2   : > { %v2154_v12 = vpop.permute.xlu0 %2153  ;;  %v2157_v61 = vpop.permute.xlu1 %2156 }
 0x4d3   : > { %v2298_v34 = vmul.f32 %v2154_v12, %v3568_v11  ;;  %v2299_v9 = vmul.f32 %v2157_v61, %v3577_v23  ;;  %v2203_v39 = vrot.slane %v2154_v12, %v3624_v27  ;;  %v2207_v50 = vrot.slane %v2157_v61, %v3624_v27 }
 0x4d5   : > { %v2314_v2 = vsel %vm915_vm4, %v2298_v34, 0.0  ;;  %v2321_v16 = vsel %vm915_vm4, %v2299_v9, 0.0  ;;  %v2264_v30 = vsel %vm1726_vm5, %v2207_v50, %v2203_v39 }
 0x4d6   : > { %v2315_v47 = vrot.slane %v2314_v2, 4  ;;  %v2322_v8 = vrot.slane %v2321_v16, 4  ;;  %v2160_v54 = vpop.permute.xlu0 %2159 }
 0x4d7   : > { %v2300_v0 = vmul.f32 %v2160_v54, %v3565_v43  ;;  %v2211_v52 = vrot.slane %v2160_v54, %v3624_v27 }
 0x4d8   : > { %v2316_v38 = vadd.f32 %v2315_v47, %v2314_v2  ;;  %v2323_v26 = vadd.f32 %v2322_v8, %v2321_v16 }
 0x4d9   : > { %v2328_v40 = vsel %vm915_vm4, %v2300_v0, 0.0  ;;  %v2265_v62 = vsel %vm1728_vm6, %v2211_v52, %v2264_v30 }
 0x4da   : > { %v2317_v22 = vrot.slane %v2316_v38, 2  ;;  %v2324_v46 = vrot.slane %v2323_v26, 2  ;;  %v2329_v42 = vrot.slane %v2328_v40, 4  ;;  %v2163_v4 = vpop.permute.xlu0 %2162 }
 0x4db   : > { %v2301_v11 = vmul.f32 %v2163_v4, %v3572_v15  ;;  %v2215_v13 = vrot.slane %v2163_v4, %v3624_v27 }
 0x4dc   : > { %v2318_v23 = vadd.f32 %v2317_v22, %v2316_v38  ;;  %v2325_v20 = vadd.f32 %v2324_v46, %v2323_v26  ;;  %v2330_v44 = vadd.f32 %v2329_v42, %v2328_v40 }
 0x4dd   : > { %v2335_v45 = vsel %vm915_vm4, %v2301_v11, 0.0  ;;  %v2266_v16 = vsel %vm1730_vm7, %v2215_v13, %v2265_v62 }
 0x4de   : > { %v2319_v17 = vrot.slane %v2318_v23, 1  ;;  %v2326_v10 = vrot.slane %v2325_v20, 1  ;;  %v2331_v19 = vrot.slane %v2330_v44, 2  ;;  %v2336_v6 = vrot.slane %v2335_v45, 4  ;;  %v2166_v43 = vpop.permute.xlu0 %2165 }
 0x4df   : > { %v2302_v21 = vmul.f32 %v2166_v43, %v3585_v29  ;;  %v2219_v57 = vrot.slane %v2166_v43, %v3624_v27 }
 0x4e0   : > { %v2320_v48 = vadd.f32 %v2319_v17, %v2318_v23  ;;  %v2327_v49 = vadd.f32 %v2326_v10, %v2325_v20  ;;  %v2332_v24 = vadd.f32 %v2331_v19, %v2330_v44  ;;  %v2337_v15 = vadd.f32 %v2336_v6, %v2335_v45 }
 0x4e1   : > { %v2342_v37 = vsel %vm915_vm4, %v2302_v21, 0.0  ;;  %v2267_v38 = vsel %vm1732_vm8, %v2219_v57, %v2266_v16 }
 0x4e2   : > { %v2426_v7 = vpack.c.bf16 %v2320_v48, %v2320_v48  ;;  %v2427_v35 = vpack.c.bf16 %v2327_v49, %v2327_v49  ;;  %v2333_v28 = vrot.slane %v2332_v24, 1  ;;  %v2338_v55 = vrot.slane %v2337_v15, 2  ;;  %v2169_v56 = vpop.permute.xlu0 %2168 }
 0x4e3   : > { %v2343_v25 = vrot.slane %v2342_v37, 4  ;;  %v2303_v29 = vmul.f32 %v2169_v56, %v3593_v41  ;;  %v2223_v54 = vrot.slane %v2169_v56, %v3624_v27 }
 0x4e4   : > { %v2469_v5 = vunpack.c.l.b16 %v2426_v7  ;;  %v2470_v31 = vunpack.c.l.b16 %v2427_v35  ;;  %v2334_v3 = vadd.f32 %v2333_v28, %v2332_v24  ;;  %v2339_v36 = vadd.f32 %v2338_v55, %v2337_v15 }
 0x4e5   : > { %v2344_v58 = vadd.f32 %v2343_v25, %v2342_v37  ;;  %v2349_v12 = vsel %vm915_vm4, %v2303_v29, 0.0  ;;  %v2268_v10 = vsel %vm1734_vm9, %v2223_v54, %v2267_v38 }
 0x4e6   : > { %v2485_v61 = vsel %vm1726_vm5, %v2470_v31, %v2469_v5  ;;  %v2428_v34 = vpack.c.bf16 %v2334_v3, %v2334_v3  ;;  %v2340_v9 = vrot.slane %v2339_v36, 1  ;;  %v2350_v2 = vrot.slane %v2349_v12, 4 }
 0x4e7   : > { %v2345_v47 = vrot.slane %v2344_v58, 2 }
 0x4e8   : > { %v2471_v41 = vunpack.c.l.b16 %v2428_v34  ;;  %v2341_v8 = vadd.f32 %v2340_v9, %v2339_v36  ;;  %v2351_v0 = vadd.f32 %v2350_v2, %v2349_v12 }
 0x4e9   : > { %v2346_v26 = vadd.f32 %v2345_v47, %v2344_v58  ;;  %v2178_v40 = vpop.permute.xlu0 %2177  ;;  %v2181_v22 = vpop.permute.xlu1 %2180 }
 0x4ea   : > { %v2486_v46 = vsel %vm1728_vm6, %v2471_v41, %v2485_v61  ;;  %v2429_v42 = vpack.c.bf16 %v2341_v8, %v2341_v8  ;;  %v2352_v4 = vrot.slane %v2351_v0, 2  ;;  %v2235_v11 = vrot.slane %v2178_v40, %v3624_v27 }
 0x4eb   : > { %v2347_v23 = vrot.slane %v2346_v26, 1  ;;  %v2306_v20 = vmul.f32 %v2178_v40, %v3600_v33  ;;  %v2239_v44 = vrot.slane %v2181_v22, %v3624_v27  ;;  %v2307_v45 = vmul.f32 %v2181_v22, %v3607_v51 }
 0x4ec   : > { %v2472_v17 = vunpack.c.l.b16 %v2429_v42  ;;  %v2353_v19 = vadd.f32 %v2352_v4, %v2351_v0 }
 0x4ed   : > { %v2348_v6 = vadd.f32 %v2347_v23, %v2346_v26  ;;  %v2370_v43 = vsel %vm915_vm4, %v2306_v20, 0.0  ;;  %v2271_v39 = vsel %vm1726_vm5, %v2239_v44, %v2235_v11  ;;  %v2377_v50 = vsel %vm915_vm4, %v2307_v45, 0.0  ;;  %v2172_v21 = vpop.permute.xlu0 %2171  ;;  %v2184_v48 = vpop.permute.xlu1 %2183 }
 0x4ee   : > { %v2487_v49 = vsel %vm1730_vm7, %v2472_v17, %v2486_v46  ;;  %v2354_v33 = vrot.slane %v2353_v19, 1  ;;  %v2371_v24 = vrot.slane %v2370_v43, 4  ;;  %v2378_v15 = vrot.slane %v2377_v50, 4 }
 0x4ef   : > { %v2430_v52 = vpack.c.bf16 %v2348_v6, %v2348_v6  ;;  %v2227_v51 = vrot.slane %v2172_v21, %v3624_v27  ;;  %v2304_v37 = vmul.f32 %v2172_v21, %v3582_v14  ;;  %v2243_v7 = vrot.slane %v2184_v48, %v3624_v27 }
 0x4f0   : > { %v2355_v35 = vadd.f32 %v2354_v33, %v2353_v19  ;;  %v2372_v28 = vadd.f32 %v2371_v24, %v2370_v43  ;;  %v2379_v55 = vadd.f32 %v2378_v15, %v2377_v50  ;;  %v2308_v56 = vmul.f32 %v2184_v48, %v3597_v1 }
 0x4f1   : > { %v2473_v30 = vunpack.c.l.b16 %v2430_v52  ;;  %v2269_v13 = vsel %vm1736_vm10, %v2227_v51, %v2268_v10  ;;  %v2356_v25 = vsel %vm915_vm4, %v2304_v37, 0.0  ;;  %v2272_v29 = vsel %vm1728_vm6, %v2243_v7, %v2271_v39  ;;  %v2175_v5 = vpop.permute.xlu0 %2174  ;;  %v2187_v31 = vpop.permute.xlu1 %2186 }
 0x4f2   : > { %v2431_v3 = vpack.c.bf16 %v2355_v35, %v2355_v35  ;;  %v2373_v36 = vrot.slane %v2372_v28, 2  ;;  %v2380_v14 = vrot.slane %v2379_v55, 2  ;;  %v2357_v62 = vrot.slane %v2356_v25, 4 }
 0x4f3   : > { %v2488_v57 = vsel %vm1732_vm8, %v2473_v30, %v2487_v49  ;;  %v2384_v58 = vsel %vm915_vm4, %v2308_v56, 0.0  ;;  %v2231_v1 = vrot.slane %v2175_v5, %v3624_v27  ;;  %v2305_v12 = vmul.f32 %v2175_v5, %v3588_v18 }
 0x4f4   : > { %v2474_v61 = vunpack.c.l.b16 %v2431_v3  ;;  %v2374_v34 = vadd.f32 %v2373_v36, %v2372_v28  ;;  %v2381_v9 = vadd.f32 %v2380_v14, %v2379_v55  ;;  %v2358_v2 = vadd.f32 %v2357_v62, %v2356_v25 }
 0x4f5   : > { %v2385_v16 = vrot.slane %v2384_v58, 4  ;;  %v2270_v47 = vsel %vm1738_vm11, %v2231_v1, %v2269_v13  ;;  %v2363_v41 = vsel %vm915_vm4, %v2305_v12, 0.0  ;;  %v2247_v8 = vrot.slane %v2187_v31, %v3624_v27  ;;  %v2190_v54 = vpop.permute.xlu1 %2189 }
 0x4f6   : > { %v2489_v0 = vsel %vm1734_vm9, %v2474_v61, %v2488_v57  ;;  %v2375_v38 = vrot.slane %v2374_v34, 1  ;;  %v2382_v26 = vrot.slane %v2381_v9, 1  ;;  %v2359_v40 = vrot.slane %v2358_v2, 2  ;;  %2280 = vst.msk [vmem:[%s3923_s22] sm:$0xff] %vm1749_vm12, %v2270_v47 }
 0x4f7   : > { %v2386_v18 = vadd.f32 %v2385_v16, %v2384_v58  ;;  %v2364_v22 = vrot.slane %v2363_v41, 4  ;;  %v2273_v46 = vsel %vm1730_vm7, %v2247_v8, %v2272_v29  ;;  %v2309_v42 = vmul.f32 %v2187_v31, %v3603_v32 }
 0x4f8   : > { %v2376_v4 = vadd.f32 %v2375_v38, %v2374_v34  ;;  %v2383_v11 = vadd.f32 %v2382_v26, %v2381_v9  ;;  %v2360_v23 = vadd.f32 %v2359_v40, %v2358_v2  ;;  %v2251_v20 = vrot.slane %v2190_v54, %v3624_v27 }
 0x4f9   : > { %v2387_v44 = vrot.slane %v2386_v18, 2  ;;  %v2365_v45 = vadd.f32 %v2364_v22, %v2363_v41  ;;  %v2391_v17 = vsel %vm915_vm4, %v2309_v42, 0.0  ;;  %v2310_v10 = vmul.f32 %v2190_v54, %v3613_v59  ;;  %v2193_v19 = vpop.permute.xlu1 %2192 }
 0x4fa   : > { %v2434_v6 = vpack.c.bf16 %v2376_v4, %v2376_v4  ;;  %v2435_v43 = vpack.c.bf16 %v2383_v11, %v2383_v11  ;;  %v2361_v39 = vrot.slane %v2360_v23, 1  ;;  %v2392_v50 = vrot.slane %v2391_v17, 4 }
 0x4fb   : > { %v2388_v21 = vadd.f32 %v2387_v44, %v2386_v18  ;;  %v2366_v48 = vrot.slane %v2365_v45, 2  ;;  %v2274_v32 = vsel %vm1732_vm8, %v2251_v20, %v2273_v46  ;;  %v2398_v49 = vsel %vm915_vm4, %v2310_v10, 0.0 }
 0x4fc   : > { %v2477_v33 = vunpack.c.l.b16 %v2434_v6  ;;  %v2478_v24 = vunpack.c.l.b16 %v2435_v43  ;;  %v2362_v15 = vadd.f32 %v2361_v39, %v2360_v23  ;;  %v2393_v52 = vadd.f32 %v2392_v50, %v2391_v17 }
 0x4fd   : > { %v2389_v51 = vrot.slane %v2388_v21, 1  ;;  %v2367_v37 = vadd.f32 %v2366_v48, %v2365_v45  ;;  %v2399_v7 = vrot.slane %v2398_v49, 4  ;;  %v2255_v59 = vrot.slane %v2193_v19, %v3624_v27  ;;  %v2196_v35 = vpop.permute.xlu1 %2195 }
 0x4fe   : > { %v2492_v28 = vsel %vm1726_vm5, %v2478_v24, %v2477_v33  ;;  %v2432_v55 = vpack.c.bf16 %v2362_v15, %v2362_v15  ;;  %v2394_v56 = vrot.slane %v2393_v52, 2  ;;  %v2311_v30 = vmul.f32 %v2193_v19, %v3618_v63 }
 0x4ff   : > { %v2390_v13 = vadd.f32 %v2389_v51, %v2388_v21  ;;  %v2368_v25 = vrot.slane %v2367_v37, 1  ;;  %v2400_v29 = vadd.f32 %v2399_v7, %v2398_v49  ;;  %v2275_v5 = vsel %vm1734_vm9, %v2255_v59, %v2274_v32 }
 0x500   : > { %v2475_v31 = vunpack.c.l.b16 %v2432_v55  ;;  %v2395_v3 = vadd.f32 %v2394_v56, %v2393_v52  ;;  %v2405_v36 = vsel %vm915_vm4, %v2311_v30, 0.0  ;;  %v2259_v14 = vrot.slane %v2196_v35, %v3624_v27 }
 0x501   : > { %v2436_v62 = vpack.c.bf16 %v2390_v13, %v2390_v13  ;;  %v2369_v57 = vadd.f32 %v2368_v25, %v2367_v37  ;;  %v2401_v58 = vrot.slane %v2400_v29, 2  ;;  %v2406_v1 = vrot.slane %v2405_v36, 4  ;;  %v2199_v12 = vpop.permute.xlu1 %2198  ;;  %v2895_v13 = vld [vmem:[%s4007_s11] ss:$0 sm:$0xff] }
 0x502   : > { %v2490_v61 = vsel %vm1736_vm10, %v2475_v31, %v2489_v0  ;;  %v2396_v34 = vrot.slane %v2395_v3, 1  ;;  %v2276_v63 = vsel %vm1736_vm10, %v2259_v14, %v2275_v5  ;;  %v2312_v9 = vmul.f32 %v2196_v35, %v3610_v53 }
 0x503   : > { %v2479_v2 = vunpack.c.l.b16 %v2436_v62  ;;  %v2433_v16 = vpack.c.bf16 %v2369_v57, %v2369_v57  ;;  %v2402_v47 = vadd.f32 %v2401_v58, %v2400_v29  ;;  %v2407_v41 = vadd.f32 %v2406_v1, %v2405_v36 }
 0x504   : > { %v2397_v8 = vadd.f32 %v2396_v34, %v2395_v3  ;;  %v2412_v54 = vsel %vm915_vm4, %v2312_v9, 0.0  ;;  %v2263_v38 = vrot.slane %v2199_v12, %v3624_v27  ;;  %v2313_v26 = vmul.f32 %v2199_v12, %v3616_v60 }
 0x505   : > { %v2493_v40 = vsel %vm1728_vm6, %v2479_v2, %v2492_v28  ;;  %v2476_v0 = vunpack.c.l.b16 %v2433_v16  ;;  %v2403_v18 = vrot.slane %v2402_v47, 1  ;;  %v2408_v22 = vrot.slane %v2407_v41, 2 }
 0x506   : > { %v2437_v46 = vpack.c.bf16 %v2397_v8, %v2397_v8  ;;  %v2413_v42 = vrot.slane %v2412_v54, 4  ;;  %v2277_v53 = vsel %vm1738_vm11, %v2263_v38, %v2276_v63  ;;  %v2419_v4 = vsel %vm915_vm4, %v2313_v26, 0.0 }
 0x507   : > { %v2491_v11 = vsel %vm1738_vm11, %v2476_v0, %v2490_v61  ;;  %v2404_v23 = vadd.f32 %v2403_v18, %v2402_v47  ;;  %v2409_v20 = vadd.f32 %v2408_v22, %v2407_v41  ;;  %2281 = vst.msk [vmem:[%s3923_s22 + $0x8] sm:$0xff] %vm1749_vm12, %v2277_v53  ;;  %v2420_v27 = vrot.slane %v2419_v4, 4  ;;  %v2899_v0 = vld [vmem:[%s4008_s12] ss:$0 sm:$0xff] }
 0x508   : > { %v2480_v44 = vunpack.c.l.b16 %v2437_v46  ;;  %v2414_v60 = vadd.f32 %v2413_v42, %v2412_v54  ;;  %v2900_v22 = vld [vmem:[%s4009_s13] ss:$0 sm:$0xff] }
 0x509   : > { %v2438_v45 = vpack.c.bf16 %v2404_v23, %v2404_v23  ;;  %v2410_v17 = vrot.slane %v2409_v20, 1  ;;  %v2421_v10 = vadd.f32 %v2420_v27, %v2419_v4  ;;  %v2601_v53 = vld [vmem:[%s684_s28] sm:$0xff]  ;;  %v2602_v27 = vld [vmem:[%s684_s28 + $0x8] sm:$0xff] }
 0x50a   : > { %v2494_v19 = vsel %vm1730_vm7, %v2480_v44, %v2493_v40  ;;  %v2415_v6 = vrot.slane %v2414_v60, 2 }
 0x50b   : > { %v2481_v43 = vunpack.c.l.b16 %v2438_v45  ;;  %v2411_v39 = vadd.f32 %v2410_v17, %v2409_v20  ;;  %v2422_v50 = vrot.slane %v2421_v10, 2 }
 0x50c   : > { %v2416_v21 = vadd.f32 %v2415_v6, %v2414_v60 }
 0x50d   : > { %v2495_v48 = vsel %vm1732_vm8, %v2481_v43, %v2494_v19  ;;  %v2439_v32 = vpack.c.bf16 %v2411_v39, %v2411_v39  ;;  %v2423_v49 = vadd.f32 %v2422_v50, %v2421_v10 }
 0x50e   : > { %v2417_v33 = vrot.slane %v2416_v21, 1 }
 0x50f   : > { %v2482_v24 = vunpack.c.l.b16 %v2439_v32  ;;  %v2424_v15 = vrot.slane %v2423_v49, 1 }
 0x510   : > { %v2418_v52 = vadd.f32 %v2417_v33, %v2416_v21 }
 0x511   : > { %v2496_v51 = vsel %vm1734_vm9, %v2482_v24, %v2495_v48  ;;  %v2425_v37 = vadd.f32 %v2424_v15, %v2423_v49 }
 0x512   : > { %v2440_v7 = vpack.c.bf16 %v2418_v52, %v2418_v52 }
 0x513   : > { %v2441_v59 = vpack.c.bf16 %v2425_v37, %v2425_v37 }
 0x514   : > { %v2483_v35 = vunpack.c.l.b16 %v2440_v7 }
 0x515   : > { %v2484_v28 = vunpack.c.l.b16 %v2441_v59 }
 0x516   : > { %v2497_v55 = vsel %vm1736_vm10, %v2483_v35, %v2496_v51 }
 0x517   : > { %v2498_v56 = vsel %vm1738_vm11, %v2484_v28, %v2497_v55 }
 0x518   : > { %v2499_v30 = vpack.c.b16 %v2498_v56, %v2491_v11 }
 0x51a   : > { %3030 = vmatmul.mubr.msk.bf16.vlgmr.msra.gmra.mrb[32].mxu0 %vm915_vm4, %v2499_v30 }
 0x5ed   : > { %v2549_v25 = vpop.f32.mrb[32].mxu0 }
 0x5ee   : > { %v2550_v29 = vadd.f32 %v2895_v13, %v2549_v25  ;;  %v3031_v5 = vpop.f32.mrb[33].mxu0 }
 0x5ef   : > { %v2552_v31 = vpop.f32.mrb[34].mxu0 }
 0x5f0   : > { %v2553_v3 = vadd.f32 %v2895_v13, %v2552_v31  ;;  %v3032_v36 = vpop.f32.mrb[35].mxu0  ;;  %v2558_v14 = vsel %vm1749_vm12, %v2550_v29, 0.0 }
 0x5f1   : > { %2559 = vadd.xlane.f32.xlu0 %v2558_v14 }
 0x5f2   : > { %v2561_v62 = vsel %vm1749_vm12, %v2553_v3, 0.0 }
 0x5f3   : > { %2562 = vadd.xlane.f32.xlu1 %v2561_v62 }
 0x67e   : > { %v2560_v57 = vpop.xlane.xlu0 %2559 }
 0x67f   : > { %v2565_v58 = vmul.f32 0.125, %v2560_v57 }
 0x680   : > { %v2563_v1 = vpop.xlane.xlu1 %2562 }
 0x681   : > { %v2567_v12 = vsub.f32 %v2550_v29, %v2565_v58  ;;  %v2566_v61 = vmul.f32 0.125, %v2563_v1 }
 0x683   : > { %v2568_v34 = vsub.f32 %v2553_v3, %v2566_v61  ;;  %v2569_v63 = vmul.f32 %v2567_v12, %v2567_v12 }
 0x685   : > { %v2571_v9 = vsel %vm1749_vm12, %v2569_v63, 0.0  ;;  %v2570_v2 = vmul.f32 %v2568_v34, %v2568_v34 }
 0x686   : > { %2572 = vadd.xlane.f32.xlu0 %v2571_v9 }
 0x687   : > { %v2574_v16 = vsel %vm1749_vm12, %v2570_v2, 0.0 }
 0x68a   : > { %2575 = vadd.xlane.f32.xlu0 %v2574_v16 }
 0x713   : > { %v2573_v47 = vpop.xlane.xlu0 %2572 }
 0x714   : > { %v2577_v41 = vmul.f32 0.125, %v2573_v47 }
 0x716   : > { %v2579_v8 = vadd.f32 1e-05, %v2577_v41 }
 0x717   : > { %v2576_v54 = vpop.xlane.xlu0 %2575 }
 0x718   : > { %3106 = vrsqrt.f32 %v2579_v8  ;;  %v2578_v38 = vmul.f32 0.125, %v2576_v54 }
 0x71a   : > { %v2580_v26 = vadd.f32 1e-05, %v2578_v38 }
 0x71c   : > { %3108 = vrsqrt.f32 %v2580_v26 }
 0x722   : > { %v3107_v40 = vpop.eup %3106 }
 0x723   : > { %v2583_v18 = vmul.f32 %v3107_v40, %v2567_v12 }
 0x725   : > { %v2591_v46 = vmul.f32 %v2899_v0, %v2583_v18 }
 0x726   : > { %v3109_v42 = vpop.eup %3108 }
 0x727   : > { %v2599_v4 = vadd.f32 %v2900_v22, %v2591_v46  ;;  %v2584_v11 = vmul.f32 %v3109_v42, %v2568_v34 }
 0x729   : > { %v2603_v23 = vadd.f32 %v2601_v53, %v2599_v4  ;;  %v2592_v20 = vmul.f32 %v2899_v0, %v2584_v11 }
 0x72b   : > { %2605 = vst.msk [vmem:[%s694_s23] sm:$0xff] %vm1749_vm12, %v2603_v23  ;;  %v2600_v44 = vadd.f32 %v2900_v22, %v2592_v20 }
 0x72d   : > { %v2604_v60 = vadd.f32 %v2602_v27, %v2600_v44 }
 0x72f   : > { %2606 = vst.msk [vmem:[%s694_s23 + $0x8] sm:$0xff] %vm1749_vm12, %v2604_v60 }
 0x730 PF: > { %s26_s20 = sadd.s32 1, %s3132_s20   ;;  %s4012_s18 = smov %s3128_s19 }
 0x731   : > { %p23_p5 = scmp.ge.s32.totalorder %s26_s20, 4   ;;  %s4013_s19 = smov %s4015_s21 }
 0x733   :  { %25 = sbr.rel (!%p23_p5) target bundleno = 2 (0x2), region = 133 }

</bundles_post_ra>
